<compile_context>
chip_gen: v5e
topology: v5e:2x2
jax: 0.10.0
libtpu: 0.0.40
codegen_flags: <defaults>
</compile_context>

<pallas_src>
import jax
import jax.numpy as jnp
from jax.experimental import pallas as pl
from jax.experimental.pallas import tpu as pltpu

FEATS = 6                  # edge_attr features (Linear(6,6) -> ReLU -> Linear(6,1))
PACK = 32                  # edges packed per view-row (6 * 32 = 192 lanes)
ROW_W = FEATS * PACK       # 192
MAX_BLOCK_ROWS = 4096      # view-rows per grid step (= 131072 edges, ~3 MiB of input)


def _round_up(x, m):
    return ((x + m - 1) // m) * m


def _mlp_kernel(x_ref, w1_ref, b1_ref, w2_ref, b2_ref, o_ref):
    # x_ref : [R, 192] f32  - 32 edges per row, features interleaved edge-major
    # w1_ref: [192, 192] f32 - kron(I_32, W1)            (VMEM, resident)
    # b1_ref: [1, 192]   f32 - tile(b1, 32)              (VMEM, resident)
    # w2_ref: [192, 32]  f32 - kron(I_32, 0.5*W2)        (VMEM, resident)
    # b2_ref: [1]        f32 - 0.5*b2                    (SMEM)
    # o_ref : [R, 32]    f32 - one sigmoid output per edge, same packing
    x = x_ref[...]
    # Layer 1 on the MXU (block-diagonal weights keep edges independent).
    h = jnp.dot(x, w1_ref[...], preferred_element_type=jnp.float32,
                precision=jax.lax.Precision.HIGHEST)
    h = jnp.maximum(h + b1_ref[...], 0.0)
    # Layer 2 on the MXU as well; the 0.5 for the tanh-sigmoid is pre-folded.
    y = jnp.dot(h, w2_ref[...], preferred_element_type=jnp.float32,
                precision=jax.lax.Precision.HIGHEST)
    y = y + b2_ref[0]
    # sigmoid(t) == 0.5 * tanh(t/2) + 0.5  (1 EUP op + 2 VPU ops).
    o_ref[...] = 0.5 * jnp.tanh(y) + 0.5


def net_forward(edge_attr, w1, b1, w2, b2):
    """edge_attr: [N, 6] -> [N, 1] (float32)."""
    n = edge_attr.shape[0]
    x = edge_attr.astype(jnp.float32)
    if n % PACK != 0:
        # TODO(synk): this pad is a full HBM copy; feed N % 32 == 0 upstream to
        # stay on the zero-copy path (the reshape below is free).
        x = jnp.pad(x, ((0, PACK - n % PACK), (0, 0)))
    n_pad = x.shape[0]
    n_rows = n_pad // PACK
    x_view = x.reshape(n_rows, ROW_W)   # free: row-major linear order preserved

    # Fold both tiny linears into lane-aligned block-diagonal MXU operands.
    eye = jnp.eye(PACK, dtype=jnp.float32)
    w1_bd = jnp.kron(eye, w1.astype(jnp.float32))                              # [192, 192]
    b1_t = jnp.tile(b1.astype(jnp.float32), PACK).reshape(1, ROW_W)            # [1, 192]
    w2_bd = jnp.kron(eye, (0.5 * w2.astype(jnp.float32)).reshape(FEATS, 1))    # [192, 32]
    b2_h = (0.5 * b2.astype(jnp.float32)).reshape(1)                           # [1]

    # Block sizing: big steps for DMA efficiency, but keep >= 2 grid blocks
    # when possible so both v7x TensorCores get work.
    if n_rows <= 8:
        block_rows = n_rows
    else:
        block_rows = min(MAX_BLOCK_ROWS, _round_up(pl.cdiv(n_rows, 2), 8))
    grid = (pl.cdiv(n_rows, block_rows),)   # ragged last block handled by Pallas

    out = pl.pallas_call(
        _mlp_kernel,
        out_shape=jax.ShapeDtypeStruct((n_rows, PACK), jnp.float32),
        grid=grid,
        in_specs=[
            pl.BlockSpec((block_rows, ROW_W), lambda g: (g, 0)),   # edge rows
            pl.BlockSpec((ROW_W, ROW_W), lambda g: (0, 0)),        # W1_bd (resident)
            pl.BlockSpec((1, ROW_W), lambda g: (0, 0)),            # b1 tiled (resident)
            pl.BlockSpec((ROW_W, PACK), lambda g: (0, 0)),         # W2_bd (resident)
            pl.BlockSpec(memory_space=pltpu.MemorySpace.SMEM),     # 0.5*b2 scalar
        ],
        out_specs=pl.BlockSpec((block_rows, PACK), lambda g: (g, 0)),
        compiler_params=pltpu.CompilerParams(
            dimension_semantics=("parallel",),
            vmem_limit_bytes=32 * 1024 * 1024),
        cost_estimate=pl.CostEstimate(
            flops=2 * n_rows * ROW_W * (ROW_W + PACK),
            transcendentals=n_pad,
            bytes_accessed=n_pad * (4 * FEATS + 4)),
    )(x_view, w1_bd, b1_t, w2_bd, b2_h)

    if n_pad == n:
        return out.reshape(n, 1)            # free: row-major flatten == edge order
    return out.reshape(-1)[:n].reshape(n, 1)


net_forward_jit = jax.jit(net_forward)


def init_params(key):
    # Mimics nn.Linear default init (uniform +/- 1/sqrt(fan_in)); weights are
    # stored as [in, out] so the math is x @ W + b.
    k1, k2, k3, k4 = jax.random.split(key, 4)
    bound = 1.0 / jnp.sqrt(6.0)
    w1 = jax.random.uniform(k1, (FEATS, FEATS), jnp.float32, -bound, bound)
    b1 = jax.random.uniform(k2, (FEATS,), jnp.float32, -bound, bound)
    w2 = jax.random.uniform(k3, (FEATS,), jnp.float32, -bound, bound)   # out dim = 1
    b2 = jax.random.uniform(k4, (1,), jnp.float32, -bound, bound)
    return w1, b1, w2, b2


def reference_forward(edge_attr, w1, b1, w2, b2):
    # Pure element-wise f32 reference (no MXU) for a tight accuracy check.
    h = jnp.maximum(jnp.sum(edge_attr[:, :, None] * w1[None, :, :], axis=1) + b1, 0.0)
    y = jnp.sum(h * w2[None, :], axis=1) + b2[0]
    return jax.nn.sigmoid(y).reshape(-1, 1)


if __name__ == "__main__":
    key = jax.random.PRNGKey(0)
    k_params, k_data = jax.random.split(key)
    w1, b1, w2, b2 = init_params(k_params)

    # 256 exercises the zero-copy (N % 32 == 0) path; 300 exercises the padded
    # tail + ragged last grid block.
    for n_edges, k in zip((256, 300), jax.random.split(k_data, 2)):
        edge_attr = jax.random.normal(k, (n_edges, FEATS), dtype=jnp.float32)
        out = jax.block_until_ready(net_forward_jit(edge_attr, w1, b1, w2, b2))
        ref = reference_forward(edge_attr, w1, b1, w2, b2)
        assert out.shape == (n_edges, 1)
        assert jnp.allclose(out, ref, atol=2e-5, rtol=2e-5), \
            float(jnp.max(jnp.abs(out - ref)))

    print("KERNEL_OK")
</pallas_src>

<mosaic_0001>
module attributes {stable_mosaic.version = 11 : i64} {
  func.func @_mlp_kernel(%arg0: i32, %arg1: memref<8x192xf32, #tpu.memory_space<vmem>>, %arg2: memref<192x192xf32, #tpu.memory_space<vmem>>, %arg3: memref<1x192xf32, #tpu.memory_space<vmem>>, %arg4: memref<192x32xf32, #tpu.memory_space<vmem>>, %arg5: memref<1xf32, #tpu.memory_space<smem>>, %arg6: memref<8x32xf32, #tpu.memory_space<vmem>>) attributes {dimension_semantics = [#tpu.dimension_semantics<parallel>], iteration_bounds = array<i64: 1>, scalar_prefetch = 0 : i64, scratch_operands = 0 : i64, tpu.core_type = #tpu.core_type<tc>, window_params = [{transform_indices = @transform_0, window_bounds = array<i64: 8, 192>}, {pipeline_mode = #tpu.pipeline_mode<synchronous>, transform_indices = @transform_1, window_bounds = array<i64: 192, 192>}, {pipeline_mode = #tpu.pipeline_mode<synchronous>, transform_indices = @transform_2, window_bounds = array<i64: 1, 192>}, {pipeline_mode = #tpu.pipeline_mode<synchronous>, transform_indices = @transform_3, window_bounds = array<i64: 192, 32>}, {transform_indices = @transform_4, window_bounds = array<i64: 1>}, {transform_indices = @transform_5, window_bounds = array<i64: 8, 32>}]} {
    %c0 = arith.constant 0 : index
    %c0_0 = arith.constant 0 : index
    %0 = vector.load %arg1[%c0, %c0_0] : memref<8x192xf32, #tpu.memory_space<vmem>>, vector<8x192xf32>
    %c0_1 = arith.constant 0 : index
    %c0_2 = arith.constant 0 : index
    %1 = vector.load %arg2[%c0_1, %c0_2] : memref<192x192xf32, #tpu.memory_space<vmem>>, vector<192x192xf32>
    %cst = arith.constant dense<0.000000e+00> : vector<8x192xf32>
    %2 = tpu.matmul %0, %1, %cst {dimension_numbers = #tpu.dot_dimension_numbers<[1], [0], [0], [1], [0, 0, 1, 1], [], []>, precision = #tpu.contract_precision<fp32>} : vector<8x192xf32>, vector<192x192xf32>, vector<8x192xf32> -> vector<8x192xf32>
    %c0_3 = arith.constant 0 : index
    %c0_4 = arith.constant 0 : index
    %3 = vector.load %arg3[%c0_3, %c0_4] : memref<1x192xf32, #tpu.memory_space<vmem>>, vector<1x192xf32>
    %4 = vector.broadcast %3 : vector<1x192xf32> to vector<8x192xf32>
    %5 = arith.addf %2, %4 : vector<8x192xf32>
    %cst_5 = arith.constant 0.000000e+00 : f32
    %6 = vector.broadcast %cst_5 : f32 to vector<8x192xf32>
    %7 = arith.maximumf %5, %6 : vector<8x192xf32>
    %c0_6 = arith.constant 0 : index
    %c0_7 = arith.constant 0 : index
    %8 = vector.load %arg4[%c0_6, %c0_7] : memref<192x32xf32, #tpu.memory_space<vmem>>, vector<192x32xf32>
    %cst_8 = arith.constant dense<0.000000e+00> : vector<8x32xf32>
    %9 = tpu.matmul %7, %8, %cst_8 {dimension_numbers = #tpu.dot_dimension_numbers<[1], [0], [0], [1], [0, 0, 1, 1], [], []>, precision = #tpu.contract_precision<fp32>} : vector<8x192xf32>, vector<192x32xf32>, vector<8x32xf32> -> vector<8x32xf32>
    %c0_9 = arith.constant 0 : index
    %10 = memref.load %arg5[%c0_9] : memref<1xf32, #tpu.memory_space<smem>>
    %11 = vector.broadcast %10 : f32 to vector<8x32xf32>
    %12 = arith.addf %9, %11 : vector<8x32xf32>
    %13 = math.tanh %12 : vector<8x32xf32>
    %cst_10 = arith.constant 5.000000e-01 : f32
    %14 = vector.broadcast %cst_10 : f32 to vector<8x32xf32>
    %15 = arith.mulf %14, %13 : vector<8x32xf32>
    %cst_11 = arith.constant 5.000000e-01 : f32
    %16 = vector.broadcast %cst_11 : f32 to vector<8x32xf32>
    %17 = arith.addf %15, %16 : vector<8x32xf32>
    %c0_12 = arith.constant 0 : index
    %c0_13 = arith.constant 0 : index
    %18 = vector.load %arg6[%c0_12, %c0_13] : memref<8x32xf32, #tpu.memory_space<vmem>>, vector<8x32xf32>
    tpu.vector_store %arg6[%c0_12, %c0_13], %17 {strides = array<i32>} : memref<8x32xf32, #tpu.memory_space<vmem>>, vector<8x32xf32>,
    return
  }
  func.func @transform_0(%arg0: i32) -> (i32, i32) {
    %c0_i32 = arith.constant 0 : i32
    %c0_i32_0 = arith.constant 0 : i32
    return %arg0, %c0_i32 : i32, i32
  }
  func.func @transform_1(%arg0: i32) -> (i32, i32) {
    %c0_i32 = arith.constant 0 : i32
    %c0_i32_0 = arith.constant 0 : i32
    %c0_i32_1 = arith.constant 0 : i32
    return %c0_i32, %c0_i32_0 : i32, i32
  }
  func.func @transform_2(%arg0: i32) -> (i32, i32) {
    %c0_i32 = arith.constant 0 : i32
    %c0_i32_0 = arith.constant 0 : i32
    %c0_i32_1 = arith.constant 0 : i32
    return %c0_i32, %c0_i32_0 : i32, i32
  }
  func.func @transform_3(%arg0: i32) -> (i32, i32) {
    %c0_i32 = arith.constant 0 : i32
    %c0_i32_0 = arith.constant 0 : i32
    %c0_i32_1 = arith.constant 0 : i32
    return %c0_i32, %c0_i32_0 : i32, i32
  }
  func.func @transform_4(%arg0: i32) -> i32 {
    %c0_i32 = arith.constant 0 : i32
    %c0_i32_0 = arith.constant 0 : i32
    return %c0_i32 : i32
  }
  func.func @transform_5(%arg0: i32) -> (i32, i32) {
    %c0_i32 = arith.constant 0 : i32
    %c0_i32_0 = arith.constant 0 : i32
    return %arg0, %c0_i32 : i32, i32
  }
}

</mosaic_0001>

<bundles_post_ra>
// kernel: tile.9
= control target key start
LH: loop header
LB: loop body
LE: loop exit
PB: predicated region body
PF: predicated region fallthrough
CT: control target
= control target key end

     0   :  { %vm9_vm0 = vcmask 15360   ;;  %s284_s12 = smov 126   ;;  %s285_s13 = smov 114   ;;  %vm3_vm1 = vcmask 48128   ;;  %vm13_vm2 = vcmask 31744   ;;  %vm16_vm3 = vcmask 1048560   ;;  %s430_s0 = inlined_call_operand.vmem [shape: f32[32,6], index: 0, kind: input, shape index: {}]   ;;  %s431_s1 = inlined_call_operand.vmem [shape: f32[1,192], index: 1, kind: output, shape index: {}]  }
   0x1   :  { %v220_v0 = vld [vmem:[%s430_s0 + $0x15] sm:$0x1]   ;;  %v223_v3 = vld [vmem:[%s430_s0 + $0x13] sm:$0x1]   ;;  %v225_v4 = vld [vmem:[%s430_s0 + $0x11] sm:$0x1]  }
   0x2   :  { %v221_v1 = vld [vmem:[%s430_s0 + $0x15] sm:$0x1]   ;;  %26 = vrot.lane.b32.xlu1 %v223_v3, %s285_s13  ;;  %s286_s16 = smov 102   ;;  %v222_v5 = vld [vmem:[%s430_s0 + $0x14] sm:$0x1]   ;;  %s287_s21 = smov 120  }
   0x3   :  { %v10_v2 = vsel %vm9_vm0, %v221_v1, %v220_v0  ;;  %38 = vrot.lane.b32.xlu2 %v225_v4, %s286_s16  ;;  %v224_v6 = vld [vmem:[%s430_s0 + $0x12] sm:$0x1]   ;;  %s288_s22 = smov 108   ;;  %v226_v7 = vld [vmem:[%s430_s0 + $0x10] sm:$0x1]   ;;  %s289_s25 = smov 96  }
   0x4   :  { %11 = vrot.lane.b32.xlu0 %v10_v2, %s284_s12  ;;  %v227_v8 = vld [vmem:[%s430_s0 + $0xf] sm:$0x1]   ;;  %v228_v9 = vld [vmem:[%s430_s0 + $0xe] sm:$0x1]   ;;  %s290_s30 = smov 90   ;;  %s291_s2 = smov 84  }
   0x5   :  { %v229_v10 = vld [vmem:[%s430_s0 + $0xd] sm:$0x1]   ;;  %s292_s5 = smov 78   ;;  %v230_v11 = vld [vmem:[%s430_s0 + $0xc] sm:$0x1]   ;;  %s293_s10 = smov 72  }
   0x6   :  { %v231_v12 = vld [vmem:[%s430_s0 + $0xb] sm:$0x1]   ;;  %s294_s11 = smov 66   ;;  %v232_v13 = vld [vmem:[%s430_s0 + $0xa] sm:$0x1]   ;;  %s295_s14 = smov 60  }
   0x7   :  { %v233_v14 = vld [vmem:[%s430_s0 + $0x1f] sm:$0x1]   ;;  %v234_v15 = vld [vmem:[%s430_s0 + $0x9] sm:$0x1]   ;;  %s296_s19 = smov 58   ;;  %s297_s20 = smov 54  }
   0x8   :  { %v235_v16 = vld [vmem:[%s430_s0 + $0x1e] sm:$0x1]   ;;  %s298_s23 = smov 52   ;;  %v236_v17 = vld [vmem:[%s430_s0 + $0x8] sm:$0x1]   ;;  %s299_s28 = smov 48  }
   0x9   :  { %v237_v18 = vld [vmem:[%s430_s0 + $0x1d] sm:$0x1]   ;;  %s300_s29 = smov 46   ;;  %v238_v19 = vld [vmem:[%s430_s0 + $0x7] sm:$0x1]   ;;  %s301_s3 = smov 42  }
   0xa   :  { %32 = vrot.lane.b32.xlu1 %v224_v6, %s288_s22  ;;  %v239_v20 = vld [vmem:[%s430_s0 + $0x1c] sm:$0x1]   ;;  %v240_v21 = vld [vmem:[%s430_s0 + $0x6] sm:$0x1]   ;;  %s302_s8 = smov 40   ;;  %s303_s9 = smov 36  }
   0xb   :  { %44 = vrot.lane.b32.xlu2 %v226_v7, %s289_s25  ;;  %v241_v22 = vld [vmem:[%s430_s0 + $0x1b] sm:$0x1]   ;;  %s304_s12 = smov 34   ;;  %v242_v23 = vld [vmem:[%s430_s0 + $0x5] sm:$0x1]   ;;  %s305_s17 = smov 30  }
   0xc   :  { %20 = vrot.lane.b32.xlu0 %v222_v5, %s287_s21  ;;  %v243_v24 = vld [vmem:[%s430_s0 + $0x1a] sm:$0x1]   ;;  %s306_s18 = smov 28   ;;  %v244_v25 = vld [vmem:[%s430_s0 + $0x4] sm:$0x1]   ;;  %s307_s21 = smov 24  }
   0xd   :  { %v245_v26 = vld [vmem:[%s430_s0 + $0x19] sm:$0x1]   ;;  %v246_v27 = vld [vmem:[%s430_s0 + $0x3] sm:$0x1]   ;;  %s308_s26 = smov 22   ;;  %s309_s27 = smov 18  }
   0xe   :  { %v247_v28 = vld [vmem:[%s430_s0 + $0x18] sm:$0x1]   ;;  %v248_v29 = vld [vmem:[%s430_s0 + $0x2] sm:$0x1]   ;;  %v249_v30 = vld [vmem:[%s430_s0 + $0x17] sm:$0x1]  }
   0xf   :  { %s311_s6 = smov 12   ;;  %s312_s7 = smov 10   ;;  %v250_v31 = vld [vmem:[%s430_s0 + $0x1] sm:$0x1]   ;;  %v251_v32 = vld [vmem:[%s430_s0 + $0x16] sm:$0x1]  }
  0x10   :  { %s314_s13 = smov 4   ;;  %v2_v33 = vld [vmem:[%s430_s0] sm:$0x1]   ;;  %vm22_vm4 = vcmask 1032128   ;;  %vm28_vm5 = vcmask 982928   ;;  %vm34_vm6 = vcmask 933728  }
  0x11   :  { %4 = vst.msk [vmem:[#allocation0] sm:$0x1] %vm3_vm1, %v2_v33   ;;  %vm40_vm7 = vcmask 884528   ;;  %vm46_vm8 = vcmask 835328   ;;  %vm52_vm9 = vcmask 786128   ;;  %vm58_vm10 = vcmask 736928  }
  0x12   :  { %56 = vrot.lane.b32.xlu1 %v228_v9, %s291_s2  ;;  %vm64_vm11 = vcmask 687728   ;;  %vm70_vm12 = vcmask 638528   ;;  %vm76_vm13 = vcmask 589328   ;;  %vm82_vm14 = vcmask 540128  }
  0x13   :  { %62 = vrot.lane.b32.xlu2 %v229_v10, %s292_s5  ;;  %vm88_vm15 = vcmask 523728   ;;  %vm95_vm0 = vcmask 490928   ;;  %vm101_vm1 = vcmask 474528  }
  0x14   :  { %50 = vrot.lane.b32.xlu0 %v227_v8, %s290_s30  ;;  %s310_s30 = smov 16  }
  0x1a   :  { %74 = vrot.lane.b32.xlu1 %v231_v12, %s294_s11 }
  0x1b   :  { %80 = vrot.lane.b32.xlu2 %v232_v13, %s295_s14 }
  0x1c   :  { %68 = vrot.lane.b32.xlu0 %v230_v11, %s293_s10  ;;  %s313_s10 = smov 6  }
  0x22   :  { %93 = vrot.lane.b32.xlu1 %v234_v15, %s297_s20 }
  0x23   :  { %99 = vrot.lane.b32.xlu2 %v235_v16, %s298_s23 }
  0x24   :  { %86 = vrot.lane.b32.xlu0 %v233_v14, %s296_s19 }
  0x2a   :  { %112 = vrot.lane.b32.xlu1 %v237_v18, %s300_s29 }
  0x2b   :  { %119 = vrot.lane.b32.xlu2 %v238_v19, %s301_s3 }
  0x2c   :  { %106 = vrot.lane.b32.xlu0 %v236_v17, %s299_s28 }
  0x32   :  { %132 = vrot.lane.b32.xlu1 %v240_v21, %s303_s9 }
  0x33   :  { %138 = vrot.lane.b32.xlu2 %v241_v22, %s304_s12 }
  0x34   :  { %125 = vrot.lane.b32.xlu0 %v239_v20, %s302_s8 }
  0x3a   :  { %151 = vrot.lane.b32.xlu1 %v243_v24, %s306_s18 }
  0x3b   :  { %158 = vrot.lane.b32.xlu2 %v244_v25, %s307_s21 }
  0x3c   :  { %145 = vrot.lane.b32.xlu0 %v242_v23, %s305_s17 }
  0x42   :  { %171 = vrot.lane.b32.xlu1 %v246_v27, %s309_s27 }
  0x43   :  { %177 = vrot.lane.b32.xlu2 %v247_v28, %s310_s30 }
  0x44   :  { %164 = vrot.lane.b32.xlu0 %v245_v26, %s308_s26 }
  0x4a   :  { %190 = vrot.lane.b32.xlu1 %v249_v30, %s312_s7 }
  0x4b   :  { %197 = vrot.lane.b32.xlu2 %v250_v31, %s313_s10 }
  0x4c   :  { %184 = vrot.lane.b32.xlu0 %v248_v29, %s311_s6 }
  0x54   :  { %203 = vrot.lane.b32.xlu0 %v251_v32, %s314_s13 }
  0x5d   :  { %v39_v34 = vpop.permute.xlu2 %38  }
  0x65   :  { %v45_v35 = vpop.permute.xlu2 %44  }
  0x6d   :  { %v63_v36 = vpop.permute.xlu2 %62  }
  0x74   :  { %v27_v38 = vpop.permute.xlu1 %26  }
  0x75   :  { %v81_v39 = vpop.permute.xlu2 %80  }
  0x76   :  { %v12_v37 = vpop.permute.xlu0 %11  }
  0x77   :  { %15 = vst.msk [vmem:[#allocation0 + $0x8] sm:$0x1] %vm13_vm2, %v12_v37   ;;  %vm108_vm2 = vcmask 441728  }
  0x78   :  { %17 = vst.msk [vmem:[#allocation0] sm:$0x1] %vm16_vm3, %v12_v37   ;;  %vm114_vm3 = vcmask 425328  }
  0x7c   :  { %v33_v41 = vpop.permute.xlu1 %32  }
  0x7d   :  { %v100_v42 = vpop.permute.xlu2 %99  }
  0x7e   :  { %v21_v40 = vpop.permute.xlu0 %20  }
  0x7f   :  { %23 = vst.msk [vmem:[#allocation0] sm:$0x1] %vm22_vm4, %v21_v40   ;;  %vm121_vm4 = vcmask 392528  }
  0x80   :  { %29 = vst.msk [vmem:[#allocation0] sm:$0x1] %vm28_vm5, %v27_v38   ;;  %vm127_vm5 = vcmask 376128  }
  0x81   :  { %35 = vst.msk [vmem:[#allocation0] sm:$0x1] %vm34_vm6, %v33_v41   ;;  %vm134_vm6 = vcmask 343328  }
  0x82   :  { %41 = vst.msk [vmem:[#allocation0] sm:$0x1] %vm40_vm7, %v39_v34   ;;  %vm140_vm7 = vcmask 326928  }
  0x83   :  { %47 = vst.msk [vmem:[#allocation0] sm:$0x1] %vm46_vm8, %v45_v35   ;;  %vm147_vm8 = vcmask 294128  }
  0x84   :  { %v57_v44 = vpop.permute.xlu1 %56  }
  0x85   :  { %v120_v45 = vpop.permute.xlu2 %119  }
  0x86   :  { %v51_v43 = vpop.permute.xlu0 %50  }
  0x87   :  { %53 = vst.msk [vmem:[#allocation0] sm:$0x1] %vm52_vm9, %v51_v43   ;;  %vm153_vm9 = vcmask 277728  }
  0x88   :  { %59 = vst.msk [vmem:[#allocation0] sm:$0x1] %vm58_vm10, %v57_v44   ;;  %vm160_vm10 = vcmask 244928  }
  0x89   :  { %65 = vst.msk [vmem:[#allocation0] sm:$0x1] %vm64_vm11, %v63_v36   ;;  %vm166_vm11 = vcmask 228528  }
  0x8c   :  { %v75_v47 = vpop.permute.xlu1 %74  }
  0x8d   :  { %v139_v48 = vpop.permute.xlu2 %138  }
  0x8e   :  { %v69_v46 = vpop.permute.xlu0 %68  }
  0x8f   :  { %71 = vst.msk [vmem:[#allocation0] sm:$0x1] %vm70_vm12, %v69_v46   ;;  %vm173_vm12 = vcmask 195728  }
  0x90   :  { %77 = vst.msk [vmem:[#allocation0] sm:$0x1] %vm76_vm13, %v75_v47   ;;  %vm179_vm13 = vcmask 179328  }
  0x91   :  { %83 = vst.msk [vmem:[#allocation0] sm:$0x1] %vm82_vm14, %v81_v39   ;;  %vm186_vm14 = vcmask 146528  }
  0x94   :  { %v94_v50 = vpop.permute.xlu1 %93  }
  0x95   :  { %96 = vst.msk [vmem:[#allocation0] sm:$0x1] %vm95_vm0, %v94_v50   ;;  %v159_v51 = vpop.permute.xlu2 %158   ;;  %vm199_vm0 = vcmask 97328  }
  0x96   :  { %v87_v49 = vpop.permute.xlu0 %86  }
  0x97   :  { %90 = vst.msk [vmem:[#allocation0 + $0x8] sm:$0x1] %vm88_vm15, %v87_v49   ;;  %vm192_vm15 = vcmask 130128  }
  0x98   :  { %103 = vst.msk [vmem:[#allocation0 + $0x8] sm:$0x1] %vm101_vm1, %v100_v42   ;;  %vm205_vm1 = vcmask 80928  }
  0x9c   :  { %v113_v53 = vpop.permute.xlu1 %112  }
  0x9d   :  { %116 = vst.msk [vmem:[#allocation0 + $0x8] sm:$0x1] %vm114_vm3, %v113_v53   ;;  %v178_v54 = vpop.permute.xlu2 %177  }
  0x9e   :  { %v107_v52 = vpop.permute.xlu0 %106  }
  0x9f   :  { %109 = vst.msk [vmem:[#allocation0] sm:$0x1] %vm108_vm2, %v107_v52  }
  0xa0   :  { %122 = vst.msk [vmem:[#allocation0] sm:$0x1] %vm121_vm4, %v120_v45  }
  0xa4   :  { %v133_v56 = vpop.permute.xlu1 %132  }
  0xa5   :  { %135 = vst.msk [vmem:[#allocation0] sm:$0x1] %vm134_vm6, %v133_v56   ;;  %v198_v57 = vpop.permute.xlu2 %197  }
  0xa6   :  { %v126_v55 = vpop.permute.xlu0 %125  }
  0xa7   :  { %129 = vst.msk [vmem:[#allocation0 + $0x8] sm:$0x1] %vm127_vm5, %v126_v55  }
  0xa8   :  { %142 = vst.msk [vmem:[#allocation0 + $0x8] sm:$0x1] %vm140_vm7, %v139_v48  }
  0xac   :  { %v152_v59 = vpop.permute.xlu1 %151  }
  0xad   :  { %155 = vst.msk [vmem:[#allocation0 + $0x8] sm:$0x1] %vm153_vm9, %v152_v59  }
  0xae   :  { %v146_v58 = vpop.permute.xlu0 %145  }
  0xaf   :  { %148 = vst.msk [vmem:[#allocation0] sm:$0x1] %vm147_vm8, %v146_v58  }
  0xb0   :  { %161 = vst.msk [vmem:[#allocation0] sm:$0x1] %vm160_vm10, %v159_v51  }
  0xb4   :  { %v172_v61 = vpop.permute.xlu1 %171  }
  0xb5   :  { %174 = vst.msk [vmem:[#allocation0] sm:$0x1] %vm173_vm12, %v172_v61  }
  0xb6   :  { %v165_v60 = vpop.permute.xlu0 %164  }
  0xb7   :  { %168 = vst.msk [vmem:[#allocation0 + $0x8] sm:$0x1] %vm166_vm11, %v165_v60  }
  0xb8   :  { %181 = vst.msk [vmem:[#allocation0 + $0x8] sm:$0x1] %vm179_vm13, %v178_v54  }
  0xbc   :  { %v191_v63 = vpop.permute.xlu1 %190  }
  0xbd   :  { %194 = vst.msk [vmem:[#allocation0 + $0x8] sm:$0x1] %vm192_vm15, %v191_v63  }
  0xbe   :  { %v185_v62 = vpop.permute.xlu0 %184  }
  0xbf   :  { %187 = vst.msk [vmem:[#allocation0] sm:$0x1] %vm186_vm14, %v185_v62  }
  0xc0   :  { %200 = vst.msk [vmem:[#allocation0] sm:$0x1] %vm199_vm0, %v198_v57  }
  0xc6   :  { %v204_v0 = vpop.permute.xlu0 %203  }
  0xc7   :  { %207 = vst.msk [vmem:[#allocation0 + $0x8] sm:$0x1] %vm205_vm1, %v204_v0   ;;  %v210_v1 = vld [vmem:[#allocation0] sm:$0x1] }
  0xc8   :  { %213 = vst [vmem:[%s431_s1] sm:$0x1] %v210_v1 }
  0xce   :  { %v215_v2 = vld [vmem:[#allocation0 + $0x8] sm:$0x1] }
  0xcf   :  { %252 = vst [vmem:[%s431_s1 + $0x1] sm:$0x1] %v215_v2 }

// kernel: net_forward.1
= control target key start
LH: loop header
LB: loop body
LE: loop exit
PB: predicated region body
PF: predicated region fallthrough
CT: control target
= control target key end

     0   :  { %vm77_vm0 = vcmask 523264   ;;  %vm1849_vm1 = vcmask 261120   ;;  %s3189_s1 = inlined_call_operand.vmem [shape: f32[192,192], index: 1, kind: input, shape index: {}]   ;;  %s3190_s0 = inlined_call_operand.vmem [shape: f32[8,192], index: 0, kind: input, shape index: {}]   ;;  %s3191_s3 = inlined_call_operand.vmem [shape: f32[192,32], index: 3, kind: input, shape index: {}]   ;;  %s3192_s2 = inlined_call_operand.vmem [shape: f32[1,192], index: 2, kind: input, shape index: {}]   ;;  %s3193_s4 = inlined_call_operand.<no memory space> [shape: f32[1], index: 4, kind: input, shape index: {}]   ;;  %s3194_s5 = inlined_call_operand.vmem [shape: f32[8,32], index: 5, kind: output, shape index: {}]  }
   0x1   :  { %v53_v0 = vld [vmem:[%s3189_s1 + $0xf0] sm:$0xff]  ;;  %v51_v1 = vld [vmem:[%s3189_s1 + $0xe0] sm:$0xff] }
   0x2   :  { %v49_v2 = vld [vmem:[%s3189_s1 + $0xd0] sm:$0xff]  ;;  %v1896_v3 = vand.u32 4294901760, %v53_v0  ;;  %v1898_v4 = vand.u32 4294901760, %v51_v1  ;;  %v47_v6 = vld [vmem:[%s3189_s1 + $0xc0] sm:$0xff] }
   0x3   :  { %v1900_v5 = vand.u32 4294901760, %v49_v2  ;;  %v45_v7 = vld [vmem:[%s3189_s1 + $0xb0] sm:$0xff]  ;;  %v43_v8 = vld [vmem:[%s3189_s1 + $0xa0] sm:$0xff]  ;;  %v1911_v9 = vand.u32 4294901760, %v47_v6 }
   0x4   :  { %v1913_v10 = vand.u32 4294901760, %v45_v7  ;;  %v1915_v11 = vand.u32 4294901760, %v43_v8  ;;  %v41_v12 = vld [vmem:[%s3189_s1 + $0x90] sm:$0xff]  ;;  %v39_v13 = vld [vmem:[%s3189_s1 + $0x80] sm:$0xff]  ;;  %82 = vmatpush.msra.mxu0 %v1896_v3  ;;  %v1925_v14 = vsub.f32 %v53_v0, %v1896_v3  ;;  %v1928_v15 = vsub.f32 %v51_v1, %v1898_v4  ;;  %278 = vmatpush.msra.mxu3 %v1896_v3 }
   0x5   :  { %v1932_v16 = vsub.f32 %v49_v2, %v1900_v5  ;;  %v1934_v17 = vand.u32 4294901760, %v41_v12  ;;  %v1937_v18 = vsub.f32 %v47_v6, %v1911_v9  ;;  %v1942_v20 = vand.u32 4294901760, %v39_v13  ;;  %v37_v21 = vld [vmem:[%s3189_s1 + $0x70] sm:$0xff]  ;;  %v35_v29 = vld [vmem:[%s3189_s1 + $0x60] sm:$0xff] }
   0x6   :  { %v1940_v19 = vsub.f32 %v45_v7, %v1913_v10  ;;  %84 = vmatpush.msra.mxu0 %v1898_v4  ;;  %225 = vmatpush.msra.mxu2 %v1925_v14  ;;  %v124_v22 = vand.u32 4294901760, %v1925_v14  ;;  %v130_v23 = vand.u32 4294901760, %v1928_v15  ;;  %v1953_v25 = vsub.f32 %v43_v8, %v1915_v11  ;;  %v33_v36 = vld [vmem:[%s3189_s1 + $0x50] sm:$0xff]  ;;  %v31_v42 = vld [vmem:[%s3189_s1 + $0x40] sm:$0xff] }
   0x7   :  { %v136_v24 = vand.u32 4294901760, %v1932_v16  ;;  %280 = vmatpush.msra.mxu3 %v1898_v4  ;;  %v3207_v26 = vand.u32 4294901760, %v1937_v18  ;;  %v1958_v27 = vsub.f32 %v41_v12, %v1934_v17  ;;  %v1975_v33 = vand.u32 4294901760, %v37_v21  ;;  %v29_v48 = vld [vmem:[%s3189_s1 + $0x30] sm:$0xff]  ;;  %v27_v53 = vld [vmem:[%s3189_s1 + $0x20] sm:$0xff] }
   0x8   :  { %v3204_v28 = vand.u32 4294901760, %v1940_v19  ;;  %86 = vmatpush.msra.mxu0 %v1900_v5  ;;  %228 = vmatpush.msra.mxu2 %v1928_v15  ;;  %v125_v30 = vsub.f32 %v1925_v14, %v124_v22  ;;  %v131_v31 = vsub.f32 %v1928_v15, %v130_v23  ;;  %v1982_v35 = vsub.f32 %v39_v13, %v1942_v20  ;;  %v25_v59 = vld [vmem:[%s3189_s1 + $0x10] sm:$0xff]  ;;  %v67_v2 = vld [vmem:[%s3189_s1 + $0x160] sm:$0xff] }
   0x9   :  { %v137_v32 = vsub.f32 %v1932_v16, %v136_v24  ;;  %282 = vmatpush.msra.mxu3 %v1900_v5  ;;  %v143_v34 = vsub.f32 %v1937_v18, %v3207_v26  ;;  %v1989_v39 = vand.u32 4294901760, %v35_v29  ;;  %v3203_v40 = vand.u32 4294901760, %v1953_v25  ;;  %v69_v60 = vld [vmem:[%s3189_s1 + $0x170] sm:$0xff]  ;;  %v23_v7 = vld [vmem:[%s3189_s1] sm:$0xff] }
   0xa   :  { %88 = vmatpush.msra.mxu0 %v1911_v9  ;;  %231 = vmatpush.msra.mxu2 %v1932_v16  ;;  %v126_v37 = vand.u32 4294901760, %v125_v30  ;;  %v132_v38 = vand.u32 4294901760, %v131_v31  ;;  %v149_v41 = vsub.f32 %v1940_v19, %v3204_v28  ;;  %v2001_v44 = vsub.f32 %v37_v21, %v1975_v33  ;;  %v55_v28 = vld [vmem:[%s3189_s1 + $0x100] sm:$0xff] }
   0xb   :  { %284 = vmatpush.msra.mxu3 %v1911_v9  ;;  %v138_v43 = vand.u32 4294901760, %v137_v32  ;;  %v2003_v45 = vand.u32 4294901760, %v33_v36  ;;  %v3202_v46 = vand.u32 4294901760, %v1958_v27  ;;  %v144_v47 = vand.u32 4294901760, %v143_v34  ;;  %v65_v32 = vld [vmem:[%s3189_s1 + $0x150] sm:$0xff] }
   0xc   :  { %90 = vmatpush.msra.mxu0 %v1913_v10  ;;  %127 = vmatpush.msra.mxu1 %v126_v37  ;;  %v155_v49 = vsub.f32 %v1953_v25, %v3203_v40  ;;  %v2016_v50 = vsub.f32 %v35_v29, %v1989_v39  ;;  %v2018_v51 = vand.u32 4294901760, %v31_v42  ;;  %v3200_v52 = vand.u32 4294901760, %v1982_v35 }
   0xd   :  { %234 = vmatpush.msra.mxu2 %v1937_v18  ;;  %286 = vmatpush.msra.mxu3 %v1913_v10  ;;  %v150_v54 = vand.u32 4294901760, %v149_v41  ;;  %v161_v55 = vsub.f32 %v1958_v27, %v3202_v46  ;;  %v2031_v56 = vsub.f32 %v33_v36, %v2003_v45  ;;  %v2033_v57 = vand.u32 4294901760, %v29_v48 }
   0xe   :  { %92 = vmatpush.msra.mxu0 %v1915_v11  ;;  %133 = vmatpush.msra.mxu1 %v132_v38  ;;  %v3199_v58 = vand.u32 4294901760, %v2001_v44  ;;  %v2044_v61 = vand.u32 4294901760, %v27_v53  ;;  %v156_v62 = vand.u32 4294901760, %v155_v49  ;;  %v167_v63 = vsub.f32 %v1982_v35, %v3200_v52 }
   0xf   :  { %237 = vmatpush.msra.mxu2 %v1940_v19  ;;  %288 = vmatpush.msra.mxu3 %v1915_v11  ;;  %v2051_v0 = vsub.f32 %v31_v42, %v2018_v51  ;;  %v3197_v1 = vand.u32 4294901760, %v2016_v50  ;;  %v2059_v6 = vand.u32 4294901760, %v25_v59  ;;  %v2064_v8 = vand.u32 4294901760, %v69_v60 }
  0x10   :  { %94 = vmatpush.msra.mxu0 %v1934_v17  ;;  %139 = vmatpush.msra.mxu1 %v138_v43  ;;  %v162_v12 = vand.u32 4294901760, %v161_v55  ;;  %v173_v13 = vsub.f32 %v2001_v44, %v3199_v58  ;;  %v2071_v21 = vsub.f32 %v29_v48, %v2033_v57  ;;  %v3196_v29 = vand.u32 4294901760, %v2031_v56  ;;  %v63_v43 = vld [vmem:[%s3189_s1 + $0x140] sm:$0xff] }
  0x11   :  { %240 = vmatpush.msra.mxu2 %v1953_v25  ;;  %290 = vmatpush.msra.mxu3 %v1934_v17  ;;  %v2077_v30 = vsub.f32 %v27_v53, %v2044_v61  ;;  %v2079_v31 = vand.u32 4294901760, %v67_v2  ;;  %v168_v34 = vand.u32 4294901760, %v167_v63  ;;  %v179_v36 = vsub.f32 %v2016_v50, %v3197_v1 }
  0x12   :  { %96 = vmatpush.msra.mxu0 %v1942_v20  ;;  %145 = vmatpush.msra.mxu1 %v144_v47  ;;  %v2088_v37 = vand.u32 4294901760, %v23_v7  ;;  %v3195_v38 = vand.u32 4294901760, %v2051_v0  ;;  %v2094_v41 = vsub.f32 %v25_v59, %v2059_v6  ;;  %v2097_v42 = vsub.f32 %v69_v60, %v2064_v8  ;;  %v61_v59 = vld [vmem:[%s3189_s1 + $0x130] sm:$0xff] }
  0x13   :  { %243 = vmatpush.msra.mxu2 %v1958_v27  ;;  %292 = vmatpush.msra.mxu3 %v1942_v20  ;;  %v174_v47 = vand.u32 4294901760, %v173_v13  ;;  %v185_v48 = vsub.f32 %v2031_v56, %v3196_v29  ;;  %v3198_v49 = vand.u32 4294901760, %v2071_v21  ;;  %v2107_v53 = vand.u32 4294901760, %v65_v32 }
  0x14   :  { %98 = vmatpush.msra.mxu0 %v1975_v33  ;;  %151 = vmatpush.msra.mxu1 %v150_v54  ;;  %v3201_v54 = vand.u32 4294901760, %v2077_v30  ;;  %v2113_v55 = vsub.f32 %v67_v2, %v2079_v31  ;;  %v180_v60 = vand.u32 4294901760, %v179_v36  ;;  %v2123_v63 = vsub.f32 %v23_v7, %v2088_v37 }
  0x15   :  { %246 = vmatpush.msra.mxu2 %v1982_v35  ;;  %294 = vmatpush.msra.mxu3 %v1975_v33  ;;  %v3206_v2 = vand.u32 4294901760, %v2094_v41  ;;  %v3205_v13 = vand.u32 4294901760, %v2097_v42  ;;  %v186_v36 = vand.u32 4294901760, %v185_v48  ;;  %v197_v7 = vsub.f32 %v2071_v21, %v3198_v49  ;;  %v57_v48 = vld [vmem:[%s3189_s1 + $0x110] sm:$0xff] }
  0x16   :  { %100 = vmatpush.msra.mxu0 %v1989_v39  ;;  %157 = vmatpush.msra.mxu1 %v156_v62  ;;  %v191_v62 = vsub.f32 %v2051_v0, %v3195_v38  ;;  %v2139_v38 = vsub.f32 %v65_v32, %v2107_v53  ;;  %v2141_v29 = vand.u32 4294901760, %v61_v59  ;;  %v203_v1 = vsub.f32 %v2077_v30, %v3201_v54 }
  0x17   :  { %249 = vmatpush.msra.mxu2 %v2001_v44  ;;  %296 = vmatpush.msra.mxu3 %v1989_v39  ;;  %v3209_v49 = vand.u32 4294901760, %v2123_v63  ;;  %v209_v54 = vsub.f32 %v2094_v41, %v3206_v2  ;;  %v2172_v40 = vand.u32 4294901760, %v57_v48 }
  0x18   :  { %102 = vmatpush.msra.mxu0 %v2003_v45  ;;  %163 = vmatpush.msra.mxu1 %v162_v12  ;;  %v2125_v12 = vand.u32 4294901760, %v63_v43  ;;  %v192_v32 = vand.u32 4294901760, %v191_v62  ;;  %v198_v62 = vand.u32 4294901760, %v197_v7  ;;  %v2170_v46 = vsub.f32 %v61_v59, %v2141_v29 }
  0x19   :  { %252 = vmatpush.msra.mxu2 %v2016_v50  ;;  %298 = vmatpush.msra.mxu3 %v2003_v45  ;;  %v204_v7 = vand.u32 4294901760, %v203_v1  ;;  %v215_v59 = vsub.f32 %v2123_v63, %v3209_v49  ;;  %v21_v1 = vld [vmem:[%s3190_s0] sm:$0xff]  ;;  %v2204_v14 = vsub.f32 %v57_v48, %v2172_v40 }
  0x1a   :  { %104 = vmatpush.msra.mxu0 %v2018_v51  ;;  %169 = vmatpush.msra.mxu1 %v168_v34  ;;  %v59_v34 = vld [vmem:[%s3189_s1 + $0x120] sm:$0xff]  ;;  %v2155_v58 = vsub.f32 %v63_v43, %v2125_v12  ;;  %v3210_v43 = vand.u32 4294901760, %v2139_v38  ;;  %v489_v49 = vand.u32 4294901760, %v2170_v46 }
  0x1b   :  { %255 = vmatpush.msra.mxu2 %v2031_v56  ;;  %300 = vmatpush.msra.mxu3 %v2018_v51  ;;  %v2157_v52 = vand.u32 4294901760, %v59_v34 }
  0x1c   :  { %106 = vmatpush.msra.mxu0 %v2033_v57  ;;  %175 = vmatpush.msra.mxu1 %v174_v47  ;;  %v3208_v47 = vand.u32 4294901760, %v2113_v55  ;;  %v490_v48 = vsub.f32 %v2170_v46, %v489_v49 }
  0x1d   :  { %258 = vmatpush.msra.mxu2 %v2051_v0  ;;  %302 = vmatpush.msra.mxu3 %v2033_v57  ;;  %v2188_v2 = vsub.f32 %v59_v34, %v2157_v52  ;;  %v478_v34 = vsub.f32 %v2139_v38, %v3210_v43  ;;  %v2214_v43 = vand.u32 4294901760, %v21_v1 }
  0x1e   :  { %108 = vmatpush.msra.mxu0 %v2044_v61  ;;  %181 = vmatpush.msra.mxu1 %v180_v60  ;;  %v466_v60 = vsub.f32 %v2097_v42, %v3205_v13  ;;  %v483_v13 = vand.u32 4294901760, %v2155_v58 }
  0x1f   :  { %261 = vmatpush.msra.mxu2 %v2071_v21  ;;  %304 = vmatpush.msra.mxu3 %v2044_v61 }
  0x20   :  { %110 = vmatpush.msra.mxu0 %v2059_v6  ;;  %187 = vmatpush.msra.mxu1 %v186_v36  ;;  %v472_v36 = vsub.f32 %v2113_v55, %v3208_v47  ;;  %v467_v26 = vand.u32 4294901760, %v466_v60  ;;  %v2193_v47 = vand.u32 4294901760, %v55_v28  ;;  %v216_v60 = vand.u32 4294901760, %v215_v59 }
  0x21   :  { %264 = vmatpush.msra.mxu2 %v2077_v30  ;;  %306 = vmatpush.msra.mxu3 %v2059_v6 }
  0x22   :  { %112 = vmatpush.msra.mxu0 %v2088_v37  ;;  %193 = vmatpush.msra.mxu1 %v192_v32  ;;  %v210_v32 = vand.u32 4294901760, %v209_v54  ;;  %v484_v54 = vsub.f32 %v2155_v58, %v483_v13  ;;  %v2219_v15 = vsub.f32 %v55_v28, %v2193_v47  ;;  %v3213_v28 = vand.u32 4294901760, %v1940_v19 }
  0x23   :  { %267 = vmatpush.msra.mxu2 %v2094_v41  ;;  %308 = vmatpush.msra.mxu3 %v2088_v37  ;;  %v3214_v19 = vand.u32 4294901760, %v1953_v25 }
  0x24   :  { %319 = vmatpush.msrb.mxu0 %v124_v22  ;;  %199 = vmatpush.msra.mxu1 %v198_v62  ;;  %v473_v22 = vand.u32 4294901760, %v472_v36  ;;  %v495_v62 = vand.u32 4294901760, %v2188_v2  ;;  %v501_v36 = vand.u32 4294901760, %v2204_v14  ;;  %v485_v16 = vand.u32 4294901760, %v484_v54 }
  0x25   :  { %270 = vmatpush.msra.mxu2 %v2123_v63  ;;  %468 = vmatpush.msrb.mxu3 %v467_v26  ;;  %v2233_v26 = vsub.f32 %v21_v1, %v2214_v43  ;;  %v507_v59 = vand.u32 4294901760, %v2219_v15  ;;  %v3216_v54 = vand.u32 4294901760, %v1982_v35  ;;  %v3218_v35 = vand.u32 4294901760, %v2016_v50 }
  0x26   :  { %323 = vmatpush.msrb.mxu0 %v130_v23  ;;  %205 = vmatpush.msra.mxu1 %v204_v7  ;;  %v479_v23 = vand.u32 4294901760, %v478_v34  ;;  %v3212_v7 = vand.u32 4294901760, %v1937_v18  ;;  %v22_v18 = vld [vmem:[%s3190_s0 + $0x8] sm:$0xff]  ;;  %v502_v1 = vsub.f32 %v2204_v14, %v501_v36 }
  0x27   :  { %431 = vmatpush.msrb.mxu2 %v2064_v8  ;;  %474 = vmatpush.msrb.mxu3 %v473_v22  ;;  %v79_v34 = vsel %vm77_vm0, %v22_v18, 0  ;;  %v2252_v22 = vand.u32 4294901760, %v2233_v26  ;;  %v508_v25 = vsub.f32 %v2219_v15, %v507_v59 }
  0x28   :  { %327 = vmatpush.msrb.mxu0 %v136_v24  ;;  %211 = vmatpush.msra.mxu1 %v210_v32  ;;  %v496_v24 = vsub.f32 %v2188_v2, %v495_v62  ;;  %v491_v32 = vand.u32 4294901760, %v490_v48 }
  0x29   :  { %433 = vmatpush.msrb.mxu2 %v2079_v31  ;;  %480 = vmatpush.msrb.mxu3 %v479_v23  ;;  %v2264_v23 = vand.u32 4294901760, %v79_v34  ;;  %v509_v48 = vand.u32 4294901760, %v508_v25 }
  0x2a   :  { %331 = vmatpush.msrb.mxu0 %v3212_v7  ;;  %217 = vmatpush.msra.mxu1 %v216_v60  ;;  %v3215_v60 = vand.u32 4294901760, %v1958_v27  ;;  %v3217_v27 = vand.u32 4294901760, %v2001_v44  ;;  %v52_v44 = vld [vmem:[%s3189_s1 + $0xe8] sm:$0xff] }
  0x2b   :  { %435 = vmatpush.msrb.mxu2 %v2107_v53  ;;  %486 = vmatpush.msrb.mxu3 %v485_v16  ;;  %v2280_v7 = vsub.f32 %v79_v34, %v2264_v23  ;;  %v3219_v16 = vand.u32 4294901760, %v2031_v56  ;;  %v2300_v50 = vand.u32 4294901760, %v52_v44  ;;  %v50_v56 = vld [vmem:[%s3189_s1 + $0xd8] sm:$0xff] }
  0x2c   :  { %335 = vmatpush.msrb.mxu0 %v3213_v28  ;;  %386 = vmatpush.msrb.mxu1 %v1896_v3  ;;  %v497_v3 = vand.u32 4294901760, %v496_v24  ;;  %v3220_v28 = vand.u32 4294901760, %v2051_v0  ;;  %v2315_v18 = vand.u32 4294901760, %v50_v56 }
  0x2d   :  { %437 = vmatpush.msrb.mxu2 %v2125_v12  ;;  %492 = vmatpush.msrb.mxu3 %v491_v32  ;;  %v48_v32 = vld [vmem:[%s3189_s1 + $0xc8] sm:$0xff] }
  0x2e   :  { %339 = vmatpush.msrb.mxu0 %v3214_v19  ;;  %388 = vmatpush.msrb.mxu1 %v1898_v4  ;;  %v503_v4 = vand.u32 4294901760, %v502_v1  ;;  %v2326_v1 = vsub.f32 %v52_v44, %v2300_v50  ;;  %v46_v19 = vld [vmem:[%s3189_s1 + $0xb8] sm:$0xff]  ;;  %v2342_v34 = vsub.f32 %v50_v56, %v2315_v18 }
  0x2f   :  { %439 = vmatpush.msrb.mxu2 %v2141_v29  ;;  %498 = vmatpush.msrb.mxu3 %v497_v3  ;;  %v3222_v3 = vand.u32 4294901760, %v2077_v30  ;;  %v3223_v30 = vand.u32 4294901760, %v2094_v41  ;;  %v38_v44 = vld [vmem:[%s3189_s1 + $0x78] sm:$0xff] }
  0x30   :  { %343 = vmatpush.msrb.mxu0 %v3215_v60  ;;  %390 = vmatpush.msrb.mxu1 %v1900_v5  ;;  %v116_v5 = vsub.f32 %v2233_v26, %v2252_v22  ;;  %v44_v60 = vld [vmem:[%s3189_s1 + $0xa8] sm:$0xff]  ;;  %v708_v25 = vand.u32 4294901760, %v2326_v1 }
  0x31   :  { %441 = vmatpush.msrb.mxu2 %v2157_v52  ;;  %504 = vmatpush.msrb.mxu3 %v503_v4  ;;  %v2353_v4 = vand.u32 4294901760, %v46_v19 }
  0x32   :  { %347 = vmatpush.msrb.mxu0 %v3216_v54  ;;  %392 = vmatpush.msrb.mxu1 %v1911_v9  ;;  %v54_v9 = vld [vmem:[%s3189_s1 + $0xf8] sm:$0xff] }
  0x33   :  { %443 = vmatpush.msrb.mxu2 %v2172_v40  ;;  %510 = vmatpush.msrb.mxu3 %v509_v48  ;;  %v2291_v24 = vand.u32 4294901760, %v54_v9  ;;  %v42_v54 = vld [vmem:[%s3189_s1 + $0x98] sm:$0xff]  ;;  %v714_v48 = vand.u32 4294901760, %v2342_v34 }
  0x34   :  { %351 = vmatpush.msrb.mxu0 %v3217_v27  ;;  %394 = vmatpush.msrb.mxu1 %v1913_v10  ;;  %v2284_v10 = vand.u32 4294901760, %v116_v5  ;;  %v3224_v5 = vand.u32 4294901760, %v2123_v63  ;;  %v2369_v27 = vand.u32 4294901760, %v44_v60  ;;  %v40_v63 = vld [vmem:[%s3189_s1 + $0x88] sm:$0xff] }
  0x35   :  { %445 = vmatpush.msrb.mxu2 %v2193_v47  ;;  %312 = vmatmul.f32.vlgmr.msra.gmra.mxu3 %v2252_v22 }
  0x36   :  { %273 = vmatmul.f32.vlgmr.msra.gmra.mxu2 %v2233_v26  ;;  %355 = vmatpush.msrb.mxu0 %v3218_v35  ;;  %v2385_v35 = vand.u32 4294901760, %v42_v54 }
  0x37   :  { %396 = vmatpush.msrb.mxu1 %v1915_v11  ;;  %526 = vmatpush.msra.mxu2 %v2097_v42  ;;  %v2298_v11 = vand.u32 4294901760, %v2280_v7 }
  0x38   :  { %359 = vmatpush.msrb.mxu0 %v3219_v16  ;;  %563 = vmatpush.msra.mxu3 %v2064_v8  ;;  %v3225_v16 = vand.u32 4294901760, %v2097_v42  ;;  %v36_v42 = vld [vmem:[%s3189_s1 + $0x68] sm:$0xff] }
  0x39   :  { %398 = vmatpush.msrb.mxu1 %v1934_v17  ;;  %529 = vmatpush.msra.mxu2 %v2113_v55  ;;  %v2311_v17 = vsub.f32 %v54_v9, %v2291_v24  ;;  %v449_v0 = vsub.f32 %v2280_v7, %v2298_v11  ;;  %v2383_v9 = vsub.f32 %v46_v19, %v2353_v4 }
  0x3a   :  { %118 = vmatmul.f32.vlgmr.msra.gmra.mxu0 %v2284_v10  ;;  %565 = vmatpush.msra.mxu3 %v2079_v31 }
  0x3b   :  { %400 = vmatpush.msrb.mxu1 %v1942_v20  ;;  %363 = vmatpush.msrb.mxu0 %v3220_v28  ;;  %v3221_v20 = vand.u32 4294901760, %v2071_v21  ;;  %v2337_v21 = vand.u32 4294901760, %v48_v32  ;;  %v726_v19 = vand.u32 4294901760, %v2383_v9 }
  0x3c   :  { %532 = vmatpush.msra.mxu2 %v2139_v38  ;;  %219 = vmatmul.f32.vlgmr.msra.gmra.mxu1 %v2214_v43 }
  0x3d   :  { %367 = vmatpush.msrb.mxu0 %v3221_v20  ;;  %402 = vmatpush.msrb.mxu1 %v1975_v33  ;;  %v702_v33 = vand.u32 4294901760, %v2311_v17  ;;  %v2367_v41 = vsub.f32 %v48_v32, %v2337_v21  ;;  %v2397_v32 = vsub.f32 %v44_v60, %v2369_v27  ;;  %v2399_v20 = vand.u32 4294901760, %v40_v63 }
  0x3e   :  { %535 = vmatpush.msra.mxu2 %v2155_v58  ;;  %567 = vmatpush.msra.mxu3 %v2107_v53  ;;  %v2415_v60 = vand.u32 4294901760, %v38_v44 }
  0x3f   :  { %371 = vmatpush.msrb.mxu0 %v3222_v3  ;;  %404 = vmatpush.msrb.mxu1 %v1989_v39  ;;  %v2350_v39 = vand.u32 4294901760, %v449_v0  ;;  %v720_v28 = vand.u32 4294901760, %v2367_v41  ;;  %v2413_v3 = vsub.f32 %v42_v54, %v2385_v35  ;;  %v2428_v54 = vand.u32 4294901760, %v36_v42 }
  0x40   :  { %538 = vmatpush.msra.mxu2 %v2170_v46  ;;  %569 = vmatpush.msra.mxu3 %v2125_v12 }
  0x41   :  { %375 = vmatpush.msrb.mxu0 %v3223_v30  ;;  %406 = vmatpush.msrb.mxu1 %v2003_v45  ;;  %v703_v45 = vsub.f32 %v2311_v17, %v702_v33  ;;  %v3226_v30 = vand.u32 4294901760, %v2113_v55  ;;  %v34_v55 = vld [vmem:[%s3189_s1 + $0x58] sm:$0xff] }
  0x42   :  { %541 = vmatpush.msra.mxu2 %v2188_v2  ;;  %571 = vmatpush.msra.mxu3 %v2141_v29 }
  0x43   :  { %379 = vmatpush.msrb.mxu0 %v3224_v5  ;;  %408 = vmatpush.msrb.mxu1 %v2018_v51  ;;  %v709_v51 = vsub.f32 %v2326_v1, %v708_v25  ;;  %v704_v56 = vand.u32 4294901760, %v703_v45  ;;  %v732_v5 = vand.u32 4294901760, %v2397_v32  ;;  %v2426_v45 = vsub.f32 %v40_v63, %v2399_v20 }
  0x44   :  { %544 = vmatpush.msra.mxu2 %v2204_v14  ;;  %573 = vmatpush.msra.mxu3 %v2157_v52  ;;  %v727_v63 = vsub.f32 %v2383_v9, %v726_v19 }
  0x45   :  { %381 = vmatmul.f32.vlgmr.msrb.gmra.mxu0 %v2214_v43  ;;  %451 = vmatmul.f32.vlgmr.msrb.gmra.mxu2 %v2350_v39  ;;  %v710_v0 = vand.u32 4294901760, %v709_v51  ;;  %v3227_v51 = vand.u32 4294901760, %v2139_v38  ;;  %v32_v38 = vld [vmem:[%s3189_s1 + $0x48] sm:$0xff] }
  0x46   :  { %410 = vmatpush.msrb.mxu1 %v2033_v57  ;;  %547 = vmatpush.msra.mxu2 %v2219_v15  ;;  %v715_v57 = vsub.f32 %v2342_v34, %v714_v48  ;;  %v2465_v58 = vand.u32 4294901760, %v32_v38 }
  0x47   :  { %575 = vmatpush.msra.mxu3 %v2172_v40  ;;  %596 = vmatpush.msra.mxu0 %v3225_v16  ;;  %v3211_v16 = vand.u32 4294901760, %v2413_v3 }
  0x48   :  { %512 = vmatmul.f32.vlgmr.msrb.gmra.mxu3 %v2264_v23  ;;  %660 = vmatpush.msrb.mxu2 %v2291_v24 }
  0x49   :  { %412 = vmatpush.msrb.mxu1 %v2044_v61  ;;  %577 = vmatpush.msra.mxu3 %v2193_v47  ;;  %v721_v61 = vsub.f32 %v2367_v41, %v720_v28 }
  0x4a   :  { %600 = vmatpush.msra.mxu0 %v3226_v30  ;;  %662 = vmatpush.msrb.mxu2 %v2300_v50  ;;  %v2459_v30 = vsub.f32 %v36_v42, %v2428_v54 }
  0x4b   :  { %705 = vmatpush.msrb.mxu3 %v704_v56  ;;  %414 = vmatpush.msrb.mxu1 %v2059_v6  ;;  %v716_v6 = vand.u32 4294901760, %v715_v57  ;;  %v2442_v56 = vsub.f32 %v38_v44, %v2415_v60  ;;  %v2449_v57 = vand.u32 4294901760, %v34_v55  ;;  %v733_v44 = vsub.f32 %v2397_v32, %v732_v5 }
  0x4c   :  { %604 = vmatpush.msra.mxu0 %v3227_v51  ;;  %664 = vmatpush.msrb.mxu2 %v2315_v18  ;;  %v30_v51 = vld [vmem:[%s3189_s1 + $0x38] sm:$0xff] }
  0x4d   :  { %711 = vmatpush.msrb.mxu3 %v710_v0  ;;  %416 = vmatpush.msrb.mxu1 %v2088_v37  ;;  %v722_v37 = vand.u32 4294901760, %v721_v61  ;;  %v744_v0 = vand.u32 4294901760, %v2426_v45  ;;  %v750_v42 = vand.u32 4294901760, %v2442_v56  ;;  %v28_v61 = vld [vmem:[%s3189_s1 + $0x28] sm:$0xff]  ;;  %v2482_v46 = vand.u32 4294901760, %v30_v51 }
  0x4e   :  { %418 = vmatmul.f32.vlgmr.msrb.gmra.mxu1 %v2214_v43  ;;  %550 = vmatmul.f32.vlgmr.msra.gmra.mxu2 %v2280_v7  ;;  %v2498_v2 = vand.u32 4294901760, %v28_v61 }
  0x4f   :  { %608 = vmatpush.msra.mxu0 %v483_v13  ;;  %639 = vmatpush.msra.mxu1 %v2064_v8  ;;  %v728_v8 = vand.u32 4294901760, %v727_v63  ;;  %v739_v13 = vsub.f32 %v2413_v3, %v3211_v16  ;;  %v745_v63 = vsub.f32 %v2426_v45, %v744_v0  ;;  %v756_v16 = vand.u32 4294901760, %v2459_v30 }
  0x50   :  { %666 = vmatpush.msrb.mxu2 %v2337_v21  ;;  %717 = vmatpush.msrb.mxu3 %v716_v6  ;;  %v2480_v6 = vsub.f32 %v34_v55, %v2449_v57  ;;  %v2496_v55 = vsub.f32 %v32_v38, %v2465_v58 }
  0x51   :  { %581 = vmatmul.f32.vlgmr.msra.gmra.mxu3 %v2298_v11  ;;  %612 = vmatpush.msra.mxu0 %v489_v49  ;;  %v734_v49 = vand.u32 4294901760, %v733_v44  ;;  %v2512_v44 = vsub.f32 %v30_v51, %v2482_v46  ;;  %v2525_v51 = vsub.f32 %v28_v61, %v2498_v2 }
  0x52   :  { %641 = vmatpush.msra.mxu1 %v2079_v31  ;;  %668 = vmatpush.msrb.mxu2 %v2353_v4  ;;  %v26_v31 = vld [vmem:[%s3189_s1 + $0x18] sm:$0xff]  ;;  %v762_v38 = vand.u32 4294901760, %v2480_v6 }
  0x53   :  { %723 = vmatpush.msrb.mxu3 %v722_v37  ;;  %616 = vmatpush.msra.mxu0 %v495_v62  ;;  %v740_v62 = vand.u32 4294901760, %v739_v13  ;;  %v751_v37 = vsub.f32 %v2442_v56, %v750_v42  ;;  %v2514_v14 = vand.u32 4294901760, %v26_v31 }
  0x54   :  { %643 = vmatpush.msra.mxu1 %v2107_v53  ;;  %670 = vmatpush.msrb.mxu2 %v2369_v27  ;;  %v24_v53 = vld [vmem:[%s3189_s1 + $0x8] sm:$0xff] }
  0x55   :  { %729 = vmatpush.msrb.mxu3 %v728_v8  ;;  %620 = vmatpush.msra.mxu0 %v501_v36  ;;  %v746_v36 = vand.u32 4294901760, %v745_v63  ;;  %v757_v8 = vsub.f32 %v2459_v30, %v756_v16  ;;  %v2527_v13 = vand.u32 4294901760, %v24_v53  ;;  %v752_v15 = vand.u32 4294901760, %v751_v37 }
  0x56   :  { %645 = vmatpush.msra.mxu1 %v2125_v12  ;;  %672 = vmatpush.msrb.mxu2 %v2385_v35  ;;  %v768_v12 = vand.u32 4294901760, %v2496_v55  ;;  %v780_v63 = vand.u32 4294901760, %v2525_v51 }
  0x57   :  { %735 = vmatpush.msrb.mxu3 %v734_v49  ;;  %624 = vmatpush.msra.mxu0 %v507_v59  ;;  %v774_v59 = vand.u32 4294901760, %v2512_v44  ;;  %v2537_v49 = vsub.f32 %v26_v31, %v2514_v14  ;;  %v758_v61 = vand.u32 4294901760, %v757_v8 }
  0x58   :  { %647 = vmatpush.msra.mxu1 %v2141_v29  ;;  %674 = vmatpush.msrb.mxu2 %v2399_v20  ;;  %v763_v29 = vsub.f32 %v2480_v6, %v762_v38 }
  0x59   :  { %741 = vmatpush.msrb.mxu3 %v740_v62  ;;  %803 = vmatpush.msrb.mxu0 %v2311_v17  ;;  %v2547_v62 = vsub.f32 %v24_v53, %v2527_v13  ;;  %v786_v37 = vand.u32 4294901760, %v2537_v49 }
  0x5a   :  { %626 = vmatmul.f32.vlgmr.msra.gmra.mxu0 %v2264_v23  ;;  %649 = vmatpush.msra.mxu1 %v2157_v52  ;;  %v769_v52 = vsub.f32 %v2496_v55, %v768_v12  ;;  %v764_v31 = vand.u32 4294901760, %v763_v29 }
  0x5b   :  { %676 = vmatpush.msrb.mxu2 %v2415_v60  ;;  %747 = vmatpush.msrb.mxu3 %v746_v36  ;;  %v781_v36 = vsub.f32 %v2525_v51, %v780_v63 }
  0x5c   :  { %806 = vmatpush.msrb.mxu0 %v2326_v1  ;;  %651 = vmatpush.msra.mxu1 %v2172_v40  ;;  %v775_v40 = vsub.f32 %v2512_v44, %v774_v59  ;;  %v770_v53 = vand.u32 4294901760, %v769_v52  ;;  %v64_v1 = vld [vmem:[%s3189_s1 + $0x148] sm:$0xff] }
  0x5d   :  { %678 = vmatpush.msrb.mxu2 %v2428_v54  ;;  %753 = vmatpush.msrb.mxu3 %v752_v15  ;;  %v787_v15 = vsub.f32 %v2537_v49, %v786_v37  ;;  %v782_v29 = vand.u32 4294901760, %v781_v36 }
  0x5e   :  { %809 = vmatpush.msrb.mxu0 %v2342_v34  ;;  %653 = vmatpush.msra.mxu1 %v2193_v47  ;;  %v792_v47 = vand.u32 4294901760, %v2547_v62  ;;  %v776_v8 = vand.u32 4294901760, %v775_v40  ;;  %v70_v40 = vld [vmem:[%s3189_s1 + $0x178] sm:$0xff] }
  0x5f   :  { %680 = vmatpush.msrb.mxu2 %v2449_v57  ;;  %759 = vmatpush.msrb.mxu3 %v758_v61  ;;  %v788_v52 = vand.u32 4294901760, %v787_v15  ;;  %v2597_v36 = vand.u32 4294901760, %v70_v40 }
  0x60   :  { %655 = vmatmul.f32.vlgmr.msra.gmra.mxu1 %v2264_v23  ;;  %812 = vmatpush.msrb.mxu0 %v2367_v41  ;;  %v793_v61 = vsub.f32 %v2547_v62, %v792_v47 }
  0x61   :  { %856 = vmatpush.msrb.mxu1 %v2291_v24  ;;  %682 = vmatpush.msrb.mxu2 %v2465_v58 }
  0x62   :  { %765 = vmatpush.msrb.mxu3 %v764_v31  ;;  %815 = vmatpush.msrb.mxu0 %v2383_v9  ;;  %v794_v31 = vand.u32 4294901760, %v793_v61 }
  0x63   :  { %858 = vmatpush.msrb.mxu1 %v2300_v50  ;;  %684 = vmatpush.msrb.mxu2 %v2482_v46 }
  0x64   :  { %771 = vmatpush.msrb.mxu3 %v770_v53  ;;  %818 = vmatpush.msrb.mxu0 %v2397_v32  ;;  %v68_v53 = vld [vmem:[%s3189_s1 + $0x168] sm:$0xff] }
  0x65   :  { %860 = vmatpush.msrb.mxu1 %v2315_v18  ;;  %686 = vmatpush.msrb.mxu2 %v2498_v2  ;;  %v2604_v17 = vand.u32 4294901760, %v68_v53 }
  0x66   :  { %777 = vmatpush.msrb.mxu3 %v776_v8  ;;  %821 = vmatpush.msrb.mxu0 %v2413_v3 }
  0x67   :  { %862 = vmatpush.msrb.mxu1 %v2337_v21  ;;  %688 = vmatpush.msrb.mxu2 %v2514_v14 }
  0x68   :  { %783 = vmatpush.msrb.mxu3 %v782_v29  ;;  %824 = vmatpush.msrb.mxu0 %v2426_v45 }
  0x69   :  { %864 = vmatpush.msrb.mxu1 %v2353_v4  ;;  %690 = vmatpush.msrb.mxu2 %v2527_v13 }
  0x6a   :  { %789 = vmatpush.msrb.mxu3 %v788_v52  ;;  %827 = vmatpush.msrb.mxu0 %v2442_v56 }
  0x6b   :  { %866 = vmatpush.msrb.mxu1 %v2369_v27  ;;  %897 = vmatpush.msra.mxu2 %v702_v33  ;;  %v66_v33 = vld [vmem:[%s3189_s1 + $0x158] sm:$0xff] }
  0x6c   :  { %795 = vmatpush.msrb.mxu3 %v794_v31  ;;  %830 = vmatpush.msrb.mxu0 %v2459_v30  ;;  %v2622_v34 = vand.u32 4294901760, %v66_v33 }
  0x6d   :  { %868 = vmatpush.msrb.mxu1 %v2385_v35  ;;  %901 = vmatpush.msra.mxu2 %v708_v25  ;;  %v2631_v25 = vsub.f32 %v68_v53, %v2604_v17 }
  0x6e   :  { %964 = vmatpush.msra.mxu3 %v2291_v24  ;;  %833 = vmatpush.msrb.mxu0 %v2480_v6  ;;  %v2615_v24 = vsub.f32 %v70_v40, %v2597_v36  ;;  %v2649_v9 = vsub.f32 %v66_v33, %v2622_v34 }
  0x6f   :  { %870 = vmatpush.msrb.mxu1 %v2399_v20  ;;  %905 = vmatpush.msra.mxu2 %v714_v48  ;;  %v1049_v32 = vand.u32 4294901760, %v2631_v25 }
  0x70   :  { %966 = vmatpush.msra.mxu3 %v2300_v50  ;;  %836 = vmatpush.msrb.mxu0 %v2496_v55  ;;  %v62_v50 = vld [vmem:[%s3189_s1 + $0x138] sm:$0xff]  ;;  %v1043_v41 = vand.u32 4294901760, %v2615_v24 }
  0x71   :  { %872 = vmatpush.msrb.mxu1 %v2415_v60  ;;  %909 = vmatpush.msra.mxu2 %v720_v28  ;;  %v2643_v48 = vand.u32 4294901760, %v62_v50  ;;  %v3228_v28 = vand.u32 4294901760, %v2413_v3  ;;  %v1050_v45 = vsub.f32 %v2631_v25, %v1049_v32 }
  0x72   :  { %968 = vmatpush.msra.mxu3 %v2315_v18  ;;  %839 = vmatpush.msrb.mxu0 %v2512_v44  ;;  %v2635_v18 = vand.u32 4294901760, %v64_v1  ;;  %v1044_v3 = vsub.f32 %v2615_v24, %v1043_v41 }
  0x73   :  { %874 = vmatpush.msrb.mxu1 %v2428_v54  ;;  %913 = vmatpush.msra.mxu2 %v726_v19  ;;  %v2675_v8 = vsub.f32 %v62_v50, %v2643_v48 }
  0x74   :  { %970 = vmatpush.msra.mxu3 %v2337_v21  ;;  %842 = vmatpush.msrb.mxu0 %v2525_v51  ;;  %v60_v21 = vld [vmem:[%s3189_s1 + $0x128] sm:$0xff]  ;;  %v2661_v19 = vsub.f32 %v64_v1, %v2635_v18  ;;  %v1045_v56 = vand.u32 4294901760, %v1044_v3 }
  0x75   :  { %876 = vmatpush.msrb.mxu1 %v2449_v57  ;;  %917 = vmatpush.msra.mxu2 %v732_v5  ;;  %v2669_v5 = vand.u32 4294901760, %v60_v21  ;;  %v1067_v61 = vand.u32 4294901760, %v2675_v8 }
  0x76   :  { %972 = vmatpush.msra.mxu3 %v2353_v4  ;;  %845 = vmatpush.msrb.mxu0 %v2537_v49  ;;  %v58_v4 = vld [vmem:[%s3189_s1 + $0x118] sm:$0xff]  ;;  %v1061_v15 = vand.u32 4294901760, %v2661_v19  ;;  %v1251_v49 = vld [vmem:[%s3191_s3 + $0x60] sm:$0xff] }
  0x77   :  { %878 = vmatpush.msrb.mxu1 %v2465_v58  ;;  %921 = vmatpush.msra.mxu2 %v3228_v28 }
  0x78   :  { %974 = vmatpush.msra.mxu3 %v2369_v27  ;;  %848 = vmatpush.msrb.mxu0 %v2547_v62  ;;  %v1055_v27 = vand.u32 4294901760, %v2649_v9  ;;  %v1250_v62 = vld [vmem:[%s3191_s3 + $0x58] sm:$0xff] }
  0x79   :  { %880 = vmatpush.msrb.mxu1 %v2482_v46  ;;  %925 = vmatpush.msra.mxu2 %v744_v0  ;;  %v2683_v0 = vand.u32 4294901760, %v58_v4 }
  0x7a   :  { %976 = vmatpush.msra.mxu3 %v2385_v35  ;;  %1009 = vmatpush.msra.mxu0 %v2597_v36  ;;  %v56_v35 = vld [vmem:[%s3189_s1 + $0x108] sm:$0xff] }
  0x7b   :  { %882 = vmatpush.msrb.mxu1 %v2498_v2  ;;  %929 = vmatpush.msra.mxu2 %v750_v42  ;;  %v2695_v42 = vsub.f32 %v60_v21, %v2669_v5  ;;  %v2702_v29 = vand.u32 4294901760, %v56_v35  ;;  %v2709_v30 = vsub.f32 %v58_v4, %v2683_v0  ;;  %v1245_v4 = vld [vmem:[%s3191_s3 + $0x30] sm:$0xff] }
  0x7c   :  { %978 = vmatpush.msra.mxu3 %v2399_v20  ;;  %1011 = vmatpush.msra.mxu0 %v2604_v17  ;;  %v1056_v20 = vsub.f32 %v2649_v9, %v1055_v27 }
  0x7d   :  { %884 = vmatpush.msrb.mxu1 %v2514_v14  ;;  %933 = vmatpush.msra.mxu2 %v756_v16  ;;  %v1051_v16 = vand.u32 4294901760, %v1050_v45  ;;  %v1073_v52 = vand.u32 4294901760, %v2695_v42  ;;  %v1079_v55 = vand.u32 4294901760, %v2709_v30  ;;  %v1244_v45 = vld [vmem:[%s3191_s3 + $0x28] sm:$0xff] }
  0x7e   :  { %980 = vmatpush.msra.mxu3 %v2415_v60  ;;  %1013 = vmatpush.msra.mxu0 %v2622_v34  ;;  %v1062_v60 = vsub.f32 %v2661_v19, %v1061_v15  ;;  %v1057_v6 = vand.u32 4294901760, %v1056_v20 }
  0x7f   :  { %886 = vmatpush.msrb.mxu1 %v2527_v13  ;;  %937 = vmatpush.msra.mxu2 %v762_v38  ;;  %v2725_v38 = vsub.f32 %v56_v35, %v2702_v29 }
  0x80   :  { %982 = vmatpush.msra.mxu3 %v2428_v54  ;;  %1015 = vmatpush.msra.mxu0 %v2635_v18  ;;  %v1068_v54 = vsub.f32 %v2675_v8, %v1067_v61 }
  0x81   :  { %1046 = vmatpush.msra.mxu1 %v1045_v56  ;;  %941 = vmatpush.msra.mxu2 %v768_v12  ;;  %v1085_v31 = vand.u32 4294901760, %v2725_v38  ;;  %v2900_v56 = vand.u32 4294901760, %v1245_v4 }
  0x82   :  { %984 = vmatpush.msra.mxu3 %v2449_v57  ;;  %696 = vmatmul.f32.vlgmr.msrb.gmra.mxu2 %v2284_v10  ;;  %v1063_v57 = vand.u32 4294901760, %v1062_v60  ;;  %v1074_v10 = vsub.f32 %v2695_v42, %v1073_v52  ;;  %v1069_v12 = vand.u32 4294901760, %v1068_v54 }
  0x83   :  { %1017 = vmatpush.msra.mxu0 %v2643_v48  ;;  %1052 = vmatpush.msra.mxu1 %v1051_v16  ;;  %v2914_v16 = vand.u32 4294901760, %v1244_v45 }
  0x84   :  { %945 = vmatpush.msra.mxu2 %v774_v59  ;;  %986 = vmatpush.msra.mxu3 %v2465_v58  ;;  %v1080_v58 = vsub.f32 %v2709_v30, %v1079_v55  ;;  %v1075_v44 = vand.u32 4294901760, %v1074_v10 }
  0x85   :  { %797 = vmatmul.f32.vlgmr.msrb.gmra.mxu3 %v2214_v43  ;;  %1019 = vmatpush.msra.mxu0 %v2669_v5 }
  0x86   :  { %1058 = vmatpush.msra.mxu1 %v1057_v6  ;;  %949 = vmatpush.msra.mxu2 %v780_v63  ;;  %v1081_v51 = vand.u32 4294901760, %v1080_v58  ;;  %v2927_v6 = vsub.f32 %v1245_v4, %v2900_v56 }
  0x87   :  { %988 = vmatpush.msra.mxu3 %v2482_v46  ;;  %1021 = vmatpush.msra.mxu0 %v2683_v0  ;;  %v1086_v46 = vsub.f32 %v2725_v38, %v1085_v31 }
  0x88   :  { %1064 = vmatpush.msra.mxu1 %v1063_v57  ;;  %953 = vmatpush.msra.mxu2 %v786_v37  ;;  %v2806_v37 = vand.u32 4294901760, %v1251_v49 }
  0x89   :  { %990 = vmatpush.msra.mxu3 %v2498_v2  ;;  %851 = vmatmul.f32.vlgmr.msrb.gmra.mxu0 %v2233_v26  ;;  %v1254_v26 = vld [vmem:[%s3191_s3 + $0x78] sm:$0xff]  ;;  %v1087_v2 = vand.u32 4294901760, %v1086_v46 }
  0x8a   :  { %1023 = vmatpush.msra.mxu0 %v2702_v29  ;;  %1070 = vmatpush.msra.mxu1 %v1069_v12  ;;  %v2942_v12 = vsub.f32 %v1244_v45, %v2914_v16 }
  0x8b   :  { %957 = vmatpush.msra.mxu2 %v792_v47  ;;  %992 = vmatpush.msra.mxu3 %v2514_v14  ;;  %v1253_v14 = vld [vmem:[%s3191_s3 + $0x70] sm:$0xff] }
  0x8c   :  { %1104 = vmatpush.msrb.mxu0 %v2615_v24  ;;  %959 = vmatmul.f32.vlgmr.msra.gmra.mxu2 %v2214_v43  ;;  %v2780_v59 = vand.u32 4294901760, %v1253_v14  ;;  %v1249_v47 = vld [vmem:[%s3191_s3 + $0x50] sm:$0xff]  ;;  %v2832_v24 = vsub.f32 %v1251_v49, %v2806_v37 }
  0x8d   :  { %1076 = vmatpush.msra.mxu1 %v1075_v44  ;;  %994 = vmatpush.msra.mxu3 %v2527_v13  ;;  %v2772_v13 = vand.u32 4294901760, %v1254_v26  ;;  %v2834_v1 = vand.u32 4294901760, %v1249_v47  ;;  %v1240_v44 = vld [vmem:[%s3191_s3 + $0x8] sm:$0xff] }
  0x8e   :  { %1107 = vmatpush.msrb.mxu0 %v2631_v25  ;;  %1174 = vmatpush.msrb.mxu2 %v1043_v41  ;;  %v1329_v28 = vand.u32 4294901760, %v2832_v24 }
  0x8f   :  { %996 = vmatmul.f32.vlgmr.msra.gmra.mxu3 %v2214_v43  ;;  %1082 = vmatpush.msra.mxu1 %v1081_v51  ;;  %v1252_v43 = vld [vmem:[%s3191_s3 + $0x68] sm:$0xff]  ;;  %v1365_v51 = vand.u32 4294901760, %v2927_v6 }
  0x90   :  { %1110 = vmatpush.msrb.mxu0 %v2649_v9  ;;  %1178 = vmatpush.msrb.mxu2 %v1049_v32  ;;  %v2793_v63 = vand.u32 4294901760, %v1252_v43  ;;  %v2868_v32 = vsub.f32 %v1249_v47, %v2834_v1  ;;  %v1330_v35 = vsub.f32 %v2832_v24, %v1329_v28 }
  0x91   :  { %1217 = vmatpush.msrb.mxu3 %v2597_v36  ;;  %890 = vmatmul.f32.vlgmr.msrb.gmra.mxu1 %v2252_v22  ;;  %v2791_v22 = vsub.f32 %v1254_v26, %v2772_v13 }
  0x92   :  { %1088 = vmatpush.msra.mxu1 %v1087_v2  ;;  %1113 = vmatpush.msrb.mxu0 %v2661_v19  ;;  %v2818_v53 = vsub.f32 %v1252_v43, %v2793_v63  ;;  %v1331_v60 = vand.u32 4294901760, %v1330_v35  ;;  %v1239_v43 = vld [vmem:[%s3191_s3] sm:$0xff] }
  0x93   :  { %1182 = vmatpush.msrb.mxu2 %v1055_v27  ;;  %1219 = vmatpush.msrb.mxu3 %v2604_v17  ;;  %v1311_v40 = vand.u32 4294901760, %v2791_v22  ;;  %v2986_v4 = vand.u32 4294901760, %v1239_v43 }
  0x94   :  { %1141 = vmatpush.msrb.mxu1 %v2597_v36  ;;  %1029 = vmatmul.f32.vlgmr.msra.gmra.mxu0 %v2350_v39  ;;  %v2804_v39 = vsub.f32 %v1253_v14, %v2780_v59  ;;  %v2820_v36 = vand.u32 4294901760, %v1250_v62 }
  0x95   :  { %1116 = vmatpush.msrb.mxu0 %v2675_v8  ;;  %1186 = vmatpush.msrb.mxu2 %v1061_v15  ;;  %v1312_v25 = vsub.f32 %v2791_v22, %v1311_v40  ;;  %v1341_v15 = vand.u32 4294901760, %v2868_v32 }
  0x96   :  { %1143 = vmatpush.msrb.mxu1 %v2604_v17  ;;  %1221 = vmatpush.msrb.mxu3 %v2622_v34  ;;  %v1248_v17 = vld [vmem:[%s3191_s3 + $0x48] sm:$0xff]  ;;  %v1317_v33 = vand.u32 4294901760, %v2804_v39  ;;  %v2851_v41 = vsub.f32 %v1250_v62, %v2820_v36  ;;  %v1371_v62 = vand.u32 4294901760, %v2942_v12 }
  0x97   :  { %1119 = vmatpush.msrb.mxu0 %v2695_v42  ;;  %1190 = vmatpush.msrb.mxu2 %v1067_v61  ;;  %v2841_v50 = vand.u32 4294901760, %v1248_v17  ;;  %v1313_v19 = vand.u32 4294901760, %v1312_v25  ;;  %v1366_v25 = vsub.f32 %v2927_v6, %v1365_v51 }
  0x98   :  { %1145 = vmatpush.msrb.mxu1 %v2622_v34  ;;  %1223 = vmatpush.msrb.mxu3 %v2635_v18  ;;  %v1247_v34 = vld [vmem:[%s3191_s3 + $0x40] sm:$0xff]  ;;  %v1318_v9 = vsub.f32 %v2804_v39, %v1317_v33 }
  0x99   :  { %1122 = vmatpush.msrb.mxu0 %v2709_v30  ;;  %1194 = vmatpush.msrb.mxu2 %v1073_v52  ;;  %v2855_v21 = vand.u32 4294901760, %v1247_v34  ;;  %v1242_v30 = vld [vmem:[%s3191_s3 + $0x18] sm:$0xff]  ;;  %v1342_v52 = vsub.f32 %v2868_v32, %v1341_v15  ;;  %v1367_v35 = vand.u32 4294901760, %v1366_v25 }
  0x9a   :  { %1147 = vmatpush.msrb.mxu1 %v2635_v18  ;;  %1225 = vmatpush.msrb.mxu3 %v2643_v48  ;;  %v1323_v18 = vand.u32 4294901760, %v2818_v53 }
  0x9b   :  { %1090 = vmatmul.f32.vlgmr.msra.gmra.mxu1 %v2264_v23  ;;  %1125 = vmatpush.msrb.mxu0 %v2725_v38  ;;  %v2888_v8 = vsub.f32 %v1247_v34, %v2855_v21  ;;  %v1343_v46 = vand.u32 4294901760, %v1342_v52 }
  0x9c   :  { %1149 = vmatpush.msrb.mxu1 %v2643_v48  ;;  %1198 = vmatpush.msrb.mxu2 %v1079_v55  ;;  %v1246_v48 = vld [vmem:[%s3191_s3 + $0x38] sm:$0xff]  ;;  %v1324_v3 = vsub.f32 %v2818_v53, %v1323_v18  ;;  %v1241_v55 = vld [vmem:[%s3191_s3 + $0x10] sm:$0xff] }
  0x9d   :  { %1227 = vmatpush.msrb.mxu3 %v2669_v5  ;;  %1128 = vmatmul.f32.vlgmr.msrb.gmra.mxu0 %v2280_v7  ;;  %v2873_v7 = vsub.f32 %v1248_v17, %v2841_v50  ;;  %v2884_v27 = vand.u32 4294901760, %v1246_v48  ;;  %v2959_v2 = vand.u32 4294901760, %v1241_v55  ;;  %v2974_v17 = vand.u32 4294901760, %v1240_v44 }
  0x9e   :  { %1151 = vmatpush.msrb.mxu1 %v2669_v5  ;;  %1202 = vmatpush.msrb.mxu2 %v1085_v31  ;;  %v1335_v5 = vand.u32 4294901760, %v2851_v41  ;;  %v1325_v20 = vand.u32 4294901760, %v1324_v3  ;;  %v2944_v31 = vand.u32 4294901760, %v1242_v30  ;;  %v1372_v3 = vsub.f32 %v2942_v12, %v1371_v62 }
  0x9f   :  { %1229 = vmatpush.msrb.mxu3 %v2683_v0  ;;  %1204 = vmatmul.f32.vlgmr.msrb.gmra.mxu2 %v2264_v23  ;;  %v1347_v42 = vand.u32 4294901760, %v2873_v7  ;;  %v2912_v61 = vsub.f32 %v1246_v48, %v2884_v27 }
  0xa0   :  { %1153 = vmatpush.msrb.mxu1 %v2683_v0  ;;  %1269 = vmatpush.msra.mxu0 %v2772_v13  ;;  %v1319_v0 = vand.u32 4294901760, %v1318_v9  ;;  %v2972_v47 = vsub.f32 %v1242_v30, %v2944_v31  ;;  %v2984_v9 = vsub.f32 %v1241_v55, %v2959_v2  ;;  %v1373_v30 = vand.u32 4294901760, %v1372_v3 }
  0xa1   :  { %1231 = vmatpush.msrb.mxu3 %v2702_v29  ;;  %1412 = vmatpush.msra.mxu2 %v2791_v22  ;;  %v1348_v38 = vsub.f32 %v2873_v7, %v1347_v42  ;;  %v1359_v10 = vand.u32 4294901760, %v2912_v61 }
  0xa2   :  { %1233 = vmatmul.f32.vlgmr.msrb.gmra.mxu3 %v2264_v23  ;;  %1155 = vmatpush.msrb.mxu1 %v2702_v29  ;;  %v1243_v23 = vld [vmem:[%s3191_s3 + $0x20] sm:$0xff]  ;;  %v1336_v29 = vsub.f32 %v2851_v41, %v1335_v5  ;;  %v1383_v45 = vand.u32 4294901760, %v2972_v47 }
  0xa3   :  { %1159 = vmatmul.f32.vlgmr.msrb.gmra.mxu1 %v2298_v11  ;;  %1271 = vmatpush.msra.mxu0 %v2780_v59  ;;  %v1353_v11 = vand.u32 4294901760, %v2888_v8  ;;  %v2929_v54 = vand.u32 4294901760, %v1243_v23  ;;  %v1349_v14 = vand.u32 4294901760, %v1348_v38  ;;  %v1360_v49 = vsub.f32 %v2912_v61, %v1359_v10  ;;  %v3019_v38 = vld [vmem:[%s3192_s2] sm:$0x3] }
  0xa4   :  { %1314 = vmatpush.msra.mxu1 %v1313_v19  ;;  %1415 = vmatpush.msra.mxu2 %v2804_v39  ;;  %v1337_v57 = vand.u32 4294901760, %v1336_v29  ;;  %v3006_v29 = vsub.f32 %v1239_v43, %v2986_v4 }
  0xa5   :  { %1273 = vmatpush.msra.mxu0 %v2793_v63  ;;  %1465 = vmatpush.msra.mxu3 %v2772_v13  ;;  %v1354_v58 = vsub.f32 %v2888_v8, %v1353_v11  ;;  %v2957_v26 = vsub.f32 %v1243_v23, %v2929_v54  ;;  %v1361_v19 = vand.u32 4294901760, %v1360_v49 }
  0xa6   :  { %1320 = vmatpush.msra.mxu1 %v1319_v0  ;;  %1418 = vmatpush.msra.mxu2 %v2818_v53  ;;  %v2996_v0 = vsub.f32 %v1240_v44, %v2974_v17  ;;  %v73_v44 = vperm.slane %v3019_v38, 0 }
  0xa7   :  { %1275 = vmatpush.msra.mxu0 %v2806_v37  ;;  %1467 = vmatpush.msra.mxu3 %v2780_v59  ;;  %v1355_v34 = vand.u32 4294901760, %v1354_v58  ;;  %v1377_v48 = vand.u32 4294901760, %v2957_v26  ;;  %v1401_v58 = vand.u32 4294901760, %v3006_v29 }
  0xa8   :  { %1326 = vmatpush.msra.mxu1 %v1325_v20  ;;  %1421 = vmatpush.msra.mxu2 %v2832_v24  ;;  %v1389_v20 = vand.u32 4294901760, %v2984_v9  ;;  %v1395_v52 = vand.u32 4294901760, %v2996_v0 }
  0xa9   :  { %1277 = vmatpush.msra.mxu0 %v2820_v36  ;;  %1469 = vmatpush.msra.mxu3 %v2793_v63  ;;  %v1378_v23 = vsub.f32 %v2957_v26, %v1377_v48 }
  0xaa   :  { %1332 = vmatpush.msra.mxu1 %v1331_v60  ;;  %1424 = vmatpush.msra.mxu2 %v2851_v41  ;;  %v1384_v60 = vsub.f32 %v2972_v47, %v1383_v45 }
  0xab   :  { %1279 = vmatpush.msra.mxu0 %v2834_v1  ;;  %1471 = vmatpush.msra.mxu3 %v2806_v37  ;;  %v1379_v55 = vand.u32 4294901760, %v1378_v23 }
  0xac   :  { %1338 = vmatpush.msra.mxu1 %v1337_v57  ;;  %1427 = vmatpush.msra.mxu2 %v2868_v32  ;;  %v1390_v57 = vsub.f32 %v2984_v9, %v1389_v20 }
  0xad   :  { %1281 = vmatpush.msra.mxu0 %v2841_v50  ;;  %1473 = vmatpush.msra.mxu3 %v2820_v36 }
  0xae   :  { %1344 = vmatpush.msra.mxu1 %v1343_v46  ;;  %1430 = vmatpush.msra.mxu2 %v2873_v7  ;;  %v1385_v46 = vand.u32 4294901760, %v1384_v60  ;;  %v1391_v49 = vand.u32 4294901760, %v1390_v57 }
  0xaf   :  { %1283 = vmatpush.msra.mxu0 %v2855_v21  ;;  %1475 = vmatpush.msra.mxu3 %v2834_v1 }
  0xb0   :  { %1350 = vmatpush.msra.mxu1 %v1349_v14  ;;  %1433 = vmatpush.msra.mxu2 %v2888_v8  ;;  %v1396_v14 = vsub.f32 %v2996_v0, %v1395_v52 }
  0xb1   :  { %1285 = vmatpush.msra.mxu0 %v2884_v27  ;;  %1477 = vmatpush.msra.mxu3 %v2841_v50 }
  0xb2   :  { %1356 = vmatpush.msra.mxu1 %v1355_v34  ;;  %1436 = vmatpush.msra.mxu2 %v2912_v61  ;;  %v1402_v34 = vsub.f32 %v3006_v29, %v1401_v58  ;;  %v1261_v61 = vld [vmem:[%s3191_s3 + $0xb0] sm:$0xff] }
  0xb3   :  { %1287 = vmatpush.msra.mxu0 %v2900_v56  ;;  %1479 = vmatpush.msra.mxu3 %v2855_v21 }
  0xb4   :  { %1362 = vmatpush.msra.mxu1 %v1361_v19  ;;  %1439 = vmatpush.msra.mxu2 %v2927_v6  ;;  %v1397_v19 = vand.u32 4294901760, %v1396_v14  ;;  %v1260_v6 = vld [vmem:[%s3191_s3 + $0xa8] sm:$0xff] }
  0xb5   :  { %1289 = vmatpush.msra.mxu0 %v2914_v16  ;;  %1481 = vmatpush.msra.mxu3 %v2884_v27 }
  0xb6   :  { %1368 = vmatpush.msra.mxu1 %v1367_v35  ;;  %1442 = vmatpush.msra.mxu2 %v2942_v12  ;;  %v1403_v35 = vand.u32 4294901760, %v1402_v34  ;;  %v3122_v12 = vand.u32 4294901760, %v1260_v6 }
  0xb7   :  { %1291 = vmatpush.msra.mxu0 %v2929_v54  ;;  %1483 = vmatpush.msra.mxu3 %v2900_v56  ;;  %v119_v43 = vpop.f32.mrf.mxu0 }
  0xb8   :  { %1374 = vmatpush.msra.mxu1 %v1373_v30  ;;  %1445 = vmatpush.msra.mxu2 %v2957_v26  ;;  %v120_v25 = vadd.f32 %v119_v43, %v73_v44  ;;  %v313_v60 = vpop.f32.mrf.mxu3  ;;  %v1256_v44 = vld [vmem:[%s3191_s3 + $0x88] sm:$0xff] }
  0xb9   :  { %1293 = vmatpush.msra.mxu0 %v2944_v31  ;;  %1485 = vmatpush.msra.mxu3 %v2914_v16  ;;  %v220_v3 = vpop.f32.mrf.mxu1  ;;  %v274_v30 = vpop.f32.mrf.mxu2 }
  0xba   :  { %1380 = vmatpush.msra.mxu1 %v1379_v55  ;;  %1448 = vmatpush.msra.mxu2 %v2972_v47  ;;  %v221_v23 = vadd.f32 %v220_v3, %v120_v25  ;;  %v1258_v47 = vld [vmem:[%s3191_s3 + $0x98] sm:$0xff]  ;;  %v1255_v25 = vld [vmem:[%s3191_s3 + $0x80] sm:$0xff] }
  0xbb   :  { %1295 = vmatpush.msra.mxu0 %v2959_v2  ;;  %1487 = vmatpush.msra.mxu3 %v2929_v54 }
  0xbc   :  { %1386 = vmatpush.msra.mxu1 %v1385_v46  ;;  %1451 = vmatpush.msra.mxu2 %v2984_v9  ;;  %v275_v55 = vadd.f32 %v274_v30, %v221_v23  ;;  %v1631_v23 = vand.u32 4294901760, %v1255_v25 }
  0xbd   :  { %1297 = vmatpush.msra.mxu0 %v2974_v17  ;;  %1489 = vmatpush.msra.mxu3 %v2944_v31 }
  0xbe   :  { %1392 = vmatpush.msra.mxu1 %v1391_v49  ;;  %1454 = vmatpush.msra.mxu2 %v2996_v0  ;;  %v1257_v0 = vld [vmem:[%s3191_s3 + $0x90] sm:$0xff]  ;;  %v3161_v49 = vand.u32 4294901760, %v1256_v44 }
  0xbf   :  { %1299 = vmatpush.msra.mxu0 %v2986_v4  ;;  %1491 = vmatpush.msra.mxu3 %v2959_v2  ;;  %v3152_v57 = vand.u32 4294901760, %v1257_v0 }
  0xc0   :  { %1398 = vmatpush.msra.mxu1 %v1397_v19  ;;  %1457 = vmatpush.msra.mxu2 %v3006_v29 }
  0xc1   :  { %1506 = vmatpush.msrb.mxu0 %v1311_v40  ;;  %1493 = vmatpush.msra.mxu3 %v2974_v17  ;;  %v314_v40 = vadd.f32 %v313_v60, %v275_v55  ;;  %v1681_v43 = vsub.f32 %v1257_v0, %v3152_v57 }
  0xc2   :  { %1404 = vmatpush.msra.mxu1 %v1403_v35  ;;  %v382_v22 = vpop.f32.mrf.mxu0  ;;  %v1687_v35 = vsub.f32 %v1256_v44, %v3161_v49 }
  0xc3   :  { %1510 = vmatpush.msrb.mxu0 %v1317_v33  ;;  %1495 = vmatpush.msra.mxu3 %v2986_v4  ;;  %v1682_v3 = vand.u32 4294901760, %v1681_v43 }
  0xc4   :  { %1573 = vmatpush.msrb.mxu1 %v2772_v13  ;;  %v383_v13 = vadd.f32 %v382_v22, %v314_v40  ;;  %v1688_v55 = vand.u32 4294901760, %v1687_v35  ;;  %v1693_v22 = vsub.f32 %v1255_v25, %v1631_v23 }
  0xc5   :  { %1514 = vmatpush.msrb.mxu0 %v1323_v18  ;;  %v1683_v60 = vsub.f32 %v1681_v43, %v1682_v3 }
  0xc6   :  { %1575 = vmatpush.msrb.mxu1 %v2780_v59 }
  0xc7   :  { %1518 = vmatpush.msrb.mxu0 %v1329_v28 }
  0xc8   :  { %1577 = vmatpush.msrb.mxu1 %v2793_v63  ;;  %v452_v39 = vpop.f32.mrf.mxu2 }
  0xc9   :  { %1522 = vmatpush.msrb.mxu0 %v1335_v5 }
  0xca   :  { %1579 = vmatpush.msrb.mxu1 %v2806_v37 }
  0xcb   :  { %1526 = vmatpush.msrb.mxu0 %v1341_v15  ;;  %v419_v53 = vpop.f32.mrf.mxu1  ;;  %v513_v33 = vpop.f32.mrf.mxu3 }
  0xcc   :  { %1581 = vmatpush.msrb.mxu1 %v2820_v36  ;;  %v420_v59 = vadd.f32 %v419_v53, %v383_v13  ;;  %v1689_v13 = vsub.f32 %v1687_v35, %v1688_v55  ;;  %v1694_v53 = vand.u32 4294901760, %v1693_v22 }
  0xcd   :  { %1530 = vmatpush.msrb.mxu0 %v1347_v42 }
  0xce   :  { %1583 = vmatpush.msrb.mxu1 %v2834_v1  ;;  %v453_v63 = vadd.f32 %v452_v39, %v420_v59  ;;  %v1684_v39 = vand.u32 4294901760, %v1683_v60  ;;  %v1695_v59 = vsub.f32 %v1693_v22, %v1694_v53 }
  0xcf   :  { %1534 = vmatpush.msrb.mxu0 %v1353_v11  ;;  %v3111_v11 = vand.u32 4294901760, %v1261_v61 }
  0xd0   :  { %1585 = vmatpush.msrb.mxu1 %v2841_v50  ;;  %v514_v37 = vadd.f32 %v513_v33, %v453_v63  ;;  %v1690_v33 = vand.u32 4294901760, %v1689_v13  ;;  %v74_v63 = vperm.slane %v3019_v38, 1 }
  0xd1   :  { %1538 = vmatpush.msrb.mxu0 %v1359_v10  ;;  %v551_v24 = vpop.f32.mrf.mxu2  ;;  %v3120_v10 = vsub.f32 %v1261_v61, %v3111_v11 }
  0xd2   :  { %1587 = vmatpush.msrb.mxu1 %v2855_v21  ;;  %v552_v36 = vadd.f32 %v551_v24, %v514_v37  ;;  %v1696_v37 = vand.u32 4294901760, %v1695_v59 }
  0xd3   :  { %1542 = vmatpush.msrb.mxu0 %v1365_v51  ;;  %v1658_v26 = vand.u32 4294901760, %v3120_v10 }
  0xd4   :  { %1589 = vmatpush.msrb.mxu1 %v2884_v27  ;;  %v582_v1 = vpop.f32.mrf.mxu3 }
  0xd5   :  { %1546 = vmatpush.msrb.mxu0 %v1371_v62  ;;  %v583_v50 = vadd.f32 %v582_v1, %v552_v36 }
  0xd6   :  { %1591 = vmatpush.msrb.mxu1 %v2900_v56  ;;  %v1262_v56 = vld [vmem:[%s3191_s3 + $0xb8] sm:$0xff] }
  0xd7   :  { %1550 = vmatpush.msrb.mxu0 %v1377_v48  ;;  %v627_v18 = vpop.f32.mrf.mxu0  ;;  %v3103_v42 = vand.u32 4294901760, %v1262_v56  ;;  %v1659_v48 = vsub.f32 %v3120_v10, %v1658_v26 }
  0xd8   :  { %1593 = vmatpush.msrb.mxu1 %v2914_v16  ;;  %v628_v41 = vadd.f32 %v627_v18, %v583_v50 }
  0xd9   :  { %1554 = vmatpush.msrb.mxu0 %v1383_v45  ;;  %v3109_v16 = vsub.f32 %v1262_v56, %v3103_v42  ;;  %1618 = vmatpush.msrb.mxu2 %v3103_v42  ;;  %v3145_v45 = vand.u32 4294901760, %v1258_v47 }
  0xda   :  { %1595 = vmatpush.msrb.mxu1 %v2929_v54 }
  0xdb   :  { %1558 = vmatpush.msrb.mxu0 %v1389_v20  ;;  %v1652_v54 = vand.u32 4294901760, %v3109_v16  ;;  %1620 = vmatpush.msrb.mxu2 %v3111_v11  ;;  %v1660_v20 = vand.u32 4294901760, %v1659_v48  ;;  %v1264_v48 = vstv %s3193_s4 }
  0xdc   :  { %1597 = vmatpush.msrb.mxu1 %v2944_v31  ;;  %v1259_v31 = vld [vmem:[%s3191_s3 + $0xa0] sm:$0xff] }
  0xdd   :  { %1562 = vmatpush.msrb.mxu0 %v1395_v52  ;;  %v656_v21 = vpop.f32.mrf.mxu1  ;;  %v1653_v51 = vsub.f32 %v3109_v16, %v1652_v54  ;;  %v3134_v62 = vand.u32 4294901760, %v1259_v31  ;;  %1622 = vmatpush.msrb.mxu2 %v3122_v12 }
  0xde   :  { %1599 = vmatpush.msrb.mxu1 %v2959_v2  ;;  %v657_v28 = vadd.f32 %v656_v21, %v628_v41  ;;  %v3132_v2 = vsub.f32 %v1260_v6, %v3122_v12 }
  0xdf   :  { %1566 = vmatpush.msrb.mxu0 %v1401_v58  ;;  %1624 = vmatpush.msrb.mxu2 %v3134_v62  ;;  %v1675_v58 = vsub.f32 %v1258_v47, %v3145_v45 }
  0xe0   :  { %1601 = vmatpush.msrb.mxu1 %v2974_v17  ;;  %v1237_v32 = vmax.f32 %v657_v28, 0.0  ;;  %v1654_v17 = vand.u32 4294901760, %v1653_v51  ;;  %v1664_v9 = vand.u32 4294901760, %v3132_v2 }
  0xe1   :  { %1626 = vmatpush.msrb.mxu2 %v3145_v45  ;;  %v1676_v34 = vand.u32 4294901760, %v1675_v58 }
  0xe2   :  { %1603 = vmatpush.msrb.mxu1 %v2986_v4  ;;  %v1300_v7 = vand.u32 4294901760, %v1237_v32  ;;  %v1669_v4 = vsub.f32 %v1259_v31, %v3134_v62  ;;  %1655 = vmatpush.msrb.mxu3 %v1654_v17  ;;  %v1665_v29 = vsub.f32 %v3132_v2, %v1664_v9 }
  0xe3   :  { %1628 = vmatpush.msrb.mxu2 %v3152_v57  ;;  %v1677_v30 = vsub.f32 %v1675_v58, %v1676_v34 }
  0xe4   :  { %v1301_v5 = vsub.f32 %v1237_v32, %v1300_v7  ;;  %1406 = vmatmul.f32.vlgmr.msra.gmra.mxu1 %v1300_v7  ;;  %v1670_v52 = vand.u32 4294901760, %v1669_v4  ;;  %1661 = vmatpush.msrb.mxu3 %v1660_v20  ;;  %v1666_v46 = vand.u32 4294901760, %v1665_v29 }
  0xe5   :  { %1826 = vmatpush.msra.mxu1 %v3103_v42  ;;  %1630 = vmatpush.msrb.mxu2 %v3161_v49  ;;  %v1678_v40 = vand.u32 4294901760, %v1677_v30 }
  0xe6   :  { %v1302_v27 = vand.u32 4294901760, %v1301_v5  ;;  %1460 = vmatmul.f32.vlgmr.msra.gmra.mxu2 %v1301_v5  ;;  %v1671_v14 = vsub.f32 %v1669_v4, %v1670_v52  ;;  %1667 = vmatpush.msrb.mxu3 %v1666_v46 }
  0xe7   :  { %1828 = vmatpush.msra.mxu1 %v3111_v11  ;;  %1632 = vmatpush.msrb.mxu2 %v1631_v23 }
  0xe8   :  { %v1303_v8 = vsub.f32 %v1301_v5, %v1302_v27  ;;  %1499 = vmatmul.f32.vlgmr.msra.gmra.mxu3 %v1302_v27  ;;  %v1672_v19 = vand.u32 4294901760, %v1671_v14 }
  0xe9   :  { %1830 = vmatpush.msra.mxu1 %v3122_v12  ;;  %1713 = vmatpush.msra.mxu2 %v3109_v16 }
  0xea   :  { %v1304_v15 = vand.u32 4294901760, %v1303_v8  ;;  %1673 = vmatpush.msrb.mxu3 %v1672_v19 }
  0xeb   :  { %1832 = vmatpush.msra.mxu1 %v3134_v62  ;;  %1716 = vmatpush.msra.mxu2 %v3120_v10 }
  0xec   :  { %1305 = vmatmul.f32.vlgmr.msra.gmra.mxu0 %v1304_v15  ;;  %1605 = vmatmul.f32.vlgmr.msrb.gmra.mxu1 %v1300_v7 }
  0xed   :  { %1783 = vmatpush.msra.mxu0 %v1652_v54  ;;  %1834 = vmatpush.msra.mxu1 %v3145_v45 }
  0xee   :  { %1679 = vmatpush.msrb.mxu3 %v1678_v40  ;;  %1719 = vmatpush.msra.mxu2 %v3132_v2 }
  0xef   :  { %1787 = vmatpush.msra.mxu0 %v1658_v26  ;;  %1836 = vmatpush.msra.mxu1 %v3152_v57 }
  0xf0   :  { %1685 = vmatpush.msrb.mxu3 %v1684_v39  ;;  %1722 = vmatpush.msra.mxu2 %v1669_v4 }
  0xf1   :  { %1791 = vmatpush.msra.mxu0 %v1664_v9  ;;  %1838 = vmatpush.msra.mxu1 %v3161_v49 }
  0xf2   :  { %1691 = vmatpush.msrb.mxu3 %v1690_v33  ;;  %1725 = vmatpush.msra.mxu2 %v1675_v58 }
  0xf3   :  { %1795 = vmatpush.msra.mxu0 %v1670_v52  ;;  %1840 = vmatpush.msra.mxu1 %v1631_v23 }
  0xf4   :  { %1568 = vmatmul.f32.vlgmr.msrb.gmra.mxu0 %v1300_v7  ;;  %1697 = vmatpush.msrb.mxu3 %v1696_v37 }
  0xf5   :  { %1799 = vmatpush.msra.mxu0 %v1676_v34  ;;  %1728 = vmatpush.msra.mxu2 %v1681_v43 }
  0xf6   :  { %1750 = vmatpush.msra.mxu3 %v3103_v42 }
  0xf7   :  { %1803 = vmatpush.msra.mxu0 %v1682_v3  ;;  %1731 = vmatpush.msra.mxu2 %v1687_v35 }
  0xf8   :  { %1752 = vmatpush.msra.mxu3 %v3111_v11 }
  0xf9   :  { %1807 = vmatpush.msra.mxu0 %v1688_v55  ;;  %1734 = vmatpush.msra.mxu2 %v1693_v22 }
  0xfa   :  { %1754 = vmatpush.msra.mxu3 %v3122_v12 }
  0xfb   :  { %1811 = vmatpush.msra.mxu0 %v1694_v53 }
  0xfc   :  { %1756 = vmatpush.msra.mxu3 %v3134_v62 }
  0xfe   :  { %1758 = vmatpush.msra.mxu3 %v3145_v45 }
 0x100   :  { %1760 = vmatpush.msra.mxu3 %v3152_v57 }
 0x102   :  { %1762 = vmatpush.msra.mxu3 %v3161_v49 }
 0x104   :  { %1764 = vmatpush.msra.mxu3 %v1631_v23 }
 0x105   :  { %v697_v24 = vpop.f32.mrf.mxu2 }
 0x106   :  { %v698_v36 = vadd.f32 %v697_v24, %v74_v63  ;;  %v852_v1 = vpop.f32.mrf.mxu0 }
 0x108   :  { %v798_v50 = vpop.f32.mrf.mxu3 }
 0x109   :  { %v799_v18 = vadd.f32 %v798_v50, %v698_v36 }
 0x10b   :  { %v853_v38 = vadd.f32 %v852_v1, %v799_v18 }
 0x10e   :  { %v891_v41 = vpop.f32.mrf.mxu1 }
 0x10f   :  { %v892_v21 = vadd.f32 %v891_v41, %v853_v38  ;;  %v960_v28 = vpop.f32.mrf.mxu2 }
 0x111   :  { %v961_v32 = vadd.f32 %v960_v28, %v892_v21  ;;  %v1030_v7 = vpop.f32.mrf.mxu0 }
 0x112   :  { %v997_v5 = vpop.f32.mrf.mxu3 }
 0x113   :  { %v998_v27 = vadd.f32 %v997_v5, %v961_v32 }
 0x115   :  { %v1031_v8 = vadd.f32 %v1030_v7, %v998_v27 }
 0x118   :  { %v1091_v15 = vpop.f32.mrf.mxu1 }
 0x119   :  { %v1092_v56 = vadd.f32 %v1091_v15, %v1031_v8 }
 0x11a   :  { %v1129_v42 = vpop.f32.mrf.mxu0 }
 0x11b   :  { %v1130_v61 = vadd.f32 %v1129_v42, %v1092_v56 }
 0x120   :  { %v1160_v16 = vpop.f32.mrf.mxu1 }
 0x121   :  { %v1161_v11 = vadd.f32 %v1160_v16, %v1130_v61 }
 0x122   :  { %v1205_v6 = vpop.f32.mrf.mxu2 }
 0x123   :  { %v1206_v54 = vadd.f32 %v1205_v6, %v1161_v11 }
 0x125   :  { %v1234_v10 = vpop.f32.mrf.mxu3 }
 0x126   :  { %v1235_v12 = vadd.f32 %v1234_v10, %v1206_v54 }
 0x128   :  { %v1238_v31 = vmax.f32 %v1235_v12, 0.0 }
 0x12a   :  { %v1266_v51 = vsel %vm77_vm0, %v1238_v31, 0 }
 0x12b   :  { %v1633_v26 = vand.u32 4294901760, %v1266_v51 }
 0x12d   :  { %v1634_v2 = vsub.f32 %v1266_v51, %v1633_v26  ;;  %1699 = vmatmul.f32.vlgmr.msrb.gmra.mxu3 %v1633_v26  ;;  %1813 = vmatmul.f32.vlgmr.msra.gmra.mxu0 %v1633_v26 }
 0x12e   :  { %1842 = vmatmul.f32.vlgmr.msra.gmra.mxu1 %v1633_v26 }
 0x12f   :  { %v1635_v62 = vand.u32 4294901760, %v1634_v2 }
 0x131   :  { %v1636_v47 = vsub.f32 %v1634_v2, %v1635_v62 }
 0x133   :  { %v1637_v17 = vand.u32 4294901760, %v1636_v47 }
 0x135   :  { %1638 = vmatmul.f32.vlgmr.msrb.gmra.mxu2 %v1637_v17  ;;  %1768 = vmatmul.f32.vlgmr.msra.gmra.mxu3 %v1635_v62 }
 0x13d   :  { %1737 = vmatmul.f32.vlgmr.msra.gmra.mxu2 %v1634_v2 }
 0x161   :  { %v1407_v45 = vpop.f32.mrf.mxu1 }
 0x169   :  { %v1306_v9 = vpop.f32.mrf.mxu0  ;;  %v1461_v20 = vpop.f32.mrf.mxu2 }
 0x16a   :  { %v1307_v4 = vadd.f32 %v1306_v9, %v1264_v48  ;;  %v1606_v46 = vpop.f32.mrf.mxu1 }
 0x16b   :  { %v1500_v52 = vpop.f32.mrf.mxu3 }
 0x16c   :  { %v1408_v0 = vadd.f32 %v1407_v45, %v1307_v4 }
 0x16e   :  { %v1462_v29 = vadd.f32 %v1461_v20, %v1408_v0 }
 0x170   :  { %v1501_v57 = vadd.f32 %v1500_v52, %v1462_v29 }
 0x171   :  { %v1569_v58 = vpop.f32.mrf.mxu0 }
 0x172   :  { %v1570_v44 = vadd.f32 %v1569_v58, %v1501_v57 }
 0x174   :  { %v1607_v49 = vadd.f32 %v1606_v46, %v1570_v44 }
 0x1aa   :  { %v1814_v30 = vpop.f32.mrf.mxu0 }
 0x1ab   :  { %v1843_v55 = vpop.f32.mrf.mxu1 }
 0x1b0   :  { %v1700_v14 = vpop.f32.mrf.mxu3 }
 0x1b8   :  { %v1639_v43 = vpop.f32.mrf.mxu2  ;;  %v1769_v35 = vpop.f32.mrf.mxu3 }
 0x1b9   :  { %v1640_v34 = vadd.f32 %v1639_v43, %v1607_v49 }
 0x1bb   :  { %v1701_v25 = vadd.f32 %v1700_v14, %v1640_v34 }
 0x1c0   :  { %v1738_v19 = vpop.f32.mrf.mxu2 }
 0x1c1   :  { %v1739_v3 = vadd.f32 %v1738_v19, %v1701_v25 }
 0x1c3   :  { %v1770_v23 = vadd.f32 %v1769_v35, %v1739_v3 }
 0x1c5   :  { %v1815_v60 = vadd.f32 %v1814_v30, %v1770_v23 }
 0x1c7   :  { %v1844_v22 = vadd.f32 %v1843_v55, %v1815_v60 }
 0x1c9   :  { %1855 = vtanh.f32 %v1844_v22 }
 0x1cf   :  { %v1856_v40 = vpop.eup %1855 }
 0x1d0   :  { %v1847_v39 = vmul.f32 0.5, %v1856_v40 }
 0x1d2   :  { %v1848_v13 = vadd.f32 0.5, %v1847_v39 }
 0x1d4   :  { %1850 = vst.msk [vmem:[%s3194_s5] sm:$0xff] %vm1849_vm1, %v1848_v13 }

</bundles_post_ra>
